<compile_context>
chip_gen: v6e
topology: v6e:2x2x1
jax: 0.10.0
libtpu: 0.0.40
codegen_flags: <defaults>
</compile_context>

<pallas_src>
import functools

import jax
import jax.numpy as jnp
from jax.experimental import pallas as pl
from jax.experimental.pallas import tpu as pltpu


# ----------------------------- small helpers ---------------------------------

def _round_up(n, m):
    return ((n + m - 1) // m) * m


def _layernorm(x, gamma, beta, eps=1e-5):
    mu = jnp.mean(x, axis=-1, keepdims=True)
    var = jnp.mean((x - mu) ** 2, axis=-1, keepdims=True)
    return (x - mu) * jax.lax.rsqrt(var + eps) * gamma + beta


def _softmax_last(s):
    m = jnp.max(s, axis=-1, keepdims=True)
    e = jnp.exp(s - m)
    return e / jnp.sum(e, axis=-1, keepdims=True)


_WEIGHT_ORDER = ("wq", "bq", "wk", "bk", "wv", "bv", "wo", "bo",
                 "g1", "be1", "w1", "b1", "w2", "b2", "g2", "be2")

# order of the packed per-layer D-wide vectors in the (L, 9, D) "vec" tensor
_VEC_ORDER = ("bq", "bk", "bv", "bo", "g1", "be1", "g2", "be2", "b2")


# ----------------------- fused decoder-STACK kernel --------------------------
# grid = (batch tiles, num_layers). The output block's index map ignores the
# layer axis, so the residual stream stays resident in VMEM across all layers.

def decoder_stack_kernel(x_ref, wq_ref, wk_ref, wv_ref, wo_ref, w1_ref, w2_ref,
                         b1_ref, vec_ref, out_ref, mask_ref,
                         *, num_heads, head_dim, ff_block, approx_recip):
    layer = pl.program_id(1)
    bt, S, D = x_ref.shape
    H, hd = num_heads, head_dim
    M = bt * S
    cdt = wq_ref.dtype                      # matmul compute dtype (f32 or bf16)

    # Layer 0 of every batch tile: load the embedded+pos-encoded activations
    # into the resident block and build the additive causal bias once.
    @pl.when(layer == 0)
    def _():
        out_ref[...] = x_ref[...]
        row = jax.lax.broadcasted_iota(jnp.int32, (S, S), 0)
        col = jax.lax.broadcasted_iota(jnp.int32, (S, S), 1)
        mask_ref[...] = jnp.where(col > row, -jnp.inf, 0.0).astype(jnp.float32)

    x3 = out_ref[...].astype(jnp.float32)   # (bt, S, D) residual stream (f32)
    x2 = x3.reshape(M, D)                   # fold batch*seq -> MXU M dimension
    xc = x2.astype(cdt)

    # packed per-layer D-wide vectors (one DMA): bq,bk,bv,bo,g1,be1,g2,be2,b2
    vecs = vec_ref[0]                                        # (9, D) f32
    bq, bk, bv, bo = vecs[0:1], vecs[1:2], vecs[2:3], vecs[3:4]
    g1, be1, g2, be2, b2 = vecs[4:5], vecs[5:6], vecs[6:7], vecs[7:8], vecs[8:9]

    # ---------------- multi-head self-attention (heads batched) --------------
    # 1/sqrt(hd) is already folded into wq/bq at prepare time.
    q = jnp.dot(xc, wq_ref[0], preferred_element_type=jnp.float32) + bq
    k = jnp.dot(xc, wk_ref[0], preferred_element_type=jnp.float32) + bk
    v = jnp.dot(xc, wv_ref[0], preferred_element_type=jnp.float32) + bv

    if hd % 128 == 0:
        # production path: single relayout per tensor (lane-aligned head dim)
        def split_heads(t):                 # (M, D) -> (bt*H, S, hd)
            return t.reshape(bt, S, H, hd).transpose(0, 2, 1, 3).reshape(bt * H, S, hd)

        def merge_heads(t):                 # (bt*H, S, hd) -> (M, D)
            return t.reshape(bt, H, S, hd).transpose(0, 2, 1, 3).reshape(M, D)
    else:
        # toy-shape fallback (hd < 128): lane-subtile slices (known-good lowering)
        def split_heads(t):
            return jnp.concatenate(
                [t[:, h * hd:(h + 1) * hd].reshape(bt, S, hd) for h in range(H)],
                axis=0)

        def merge_heads(t):
            return jnp.concatenate(
                [t[h * bt:(h + 1) * bt].reshape(M, hd) for h in range(H)],
                axis=-1)

    qh = split_heads(q.astype(cdt))
    kh = split_heads(k.astype(cdt))
    vh = split_heads(v.astype(cdt))

    # TODO(synk): for long S on v7x (64 MiB VMEM), replace the materialized
    # (H*bt, S, S) scores with flash-style KV tiling + online softmax.
    s = jnp.einsum("bqd,bkd->bqk", qh, kh,
                   preferred_element_type=jnp.float32)       # (H*bt, S, S)

    # torch semantics: tril(scores) then masked_fill(scores == 0, -inf),
    # realised as a precomputed additive -inf bias plus the ==0 refill.
    s = s + mask_ref[...][None, :, :]
    s = jnp.where(s == 0.0, -jnp.inf, s)

    m = jnp.max(s, axis=-1, keepdims=True)
    e = jnp.exp(s - m)
    denom = jnp.sum(e, axis=-1, keepdims=True)
    if approx_recip:
        p = e * pl.reciprocal(denom, approx=True)            # EUP slot, off VALU
    else:
        p = e / denom

    av = jnp.einsum("bqk,bkd->bqd", p.astype(cdt), vh,
                    preferred_element_type=jnp.float32)      # (H*bt, S, hd)

    merged = merge_heads(av.astype(cdt))                     # (M, D) cdt
    attn = jnp.dot(merged, wo_ref[0], preferred_element_type=jnp.float32) + bo

    # residual + LayerNorm 1 (dropout == identity)
    y = _layernorm(x2 + attn, g1, be1)

    # ------------------------------ feed-forward -----------------------------
    # d_ff chunked (static unrolled loop) to bound the f32 (M, d_ff_chunk)
    # intermediate; single chunk when d_ff <= ff_block.
    # TODO(synk): on v7x, additionally stream w1/w2 d_ff-chunks from HBM
    # (pl.ANY + manual DMA / emit_pipeline) so the full weights never need to
    # be resident in 64 MiB VMEM.
    yc = y.astype(cdt)
    d_ff = w1_ref.shape[2]
    ff = jnp.zeros((M, D), jnp.float32)
    for lo in range(0, d_ff, ff_block):
        hi = min(d_ff, lo + ff_block)
        h1 = jnp.maximum(
            jnp.dot(yc, w1_ref[0, :, lo:hi], preferred_element_type=jnp.float32)
            + b1_ref[0, :, lo:hi], 0.0)
        ff = ff + jnp.dot(h1.astype(cdt), w2_ref[0, lo:hi, :],
                          preferred_element_type=jnp.float32)
    ff = ff + b2

    # residual + LayerNorm 2
    y = _layernorm(y + ff, g2, be2)
    out_ref[...] = y.reshape(bt, S, D).astype(out_ref.dtype)


def _decoder_vmem_limit(bt, S, D, d_ff, H, w_isz, x_isz, ff_block):
    # double-buffered weight + activation blocks + per-step intermediates
    weight = (4 * D * D + 2 * D * d_ff) * w_isz + (9 * D + d_ff) * 4
    acts = bt * S * D * (x_isz + x_isz)          # x block + resident out block
    inter = (8 * bt * S * D + 3 * H * bt * S * S + 2 * bt * S * ff_block) * 4
    total = 2 * (weight + acts) + inter + S * S * 4 + (4 << 20)
    return int(min(max(total, 32 << 20), 128 << 20))


def decoder_stack(x, prep, *, num_heads, batch_block=None, ff_block_max=1024):
    B, S, D = x.shape
    L = prep["wq"].shape[0]
    d_ff = prep["w1"].shape[2]
    # Whole batch in one block by default (biggest MXU M). Only split batch
    # across the megacore "parallel" axis when MXU-bound: splitting re-streams
    # all layer weights on both cores in a weight-bandwidth-bound regime.
    bt = B if batch_block is None else batch_block
    assert B % bt == 0
    hd = D // num_heads
    cdt = jnp.dtype(prep["wq"].dtype)
    approx = cdt != jnp.dtype(jnp.float32)
    ff_block = d_ff if d_ff <= ff_block_max else ff_block_max

    kernel = functools.partial(decoder_stack_kernel, num_heads=num_heads,
                               head_dim=hd, ff_block=ff_block,
                               approx_recip=approx)

    # TODO(synk): x is only read at layer 0 of each batch tile; on v7x give it
    # single buffering (pipeline_mode=pl.Buffered(1)) to save resident VMEM.
    in_specs = [pl.BlockSpec((bt, S, D), lambda b, l: (b, 0, 0))]
    args = [x]
    for name in ("wq", "wk", "wv", "wo", "w1", "w2", "b1", "vec"):
        w = prep[name]
        in_specs.append(pl.BlockSpec((1,) + w.shape[1:], lambda b, l: (l, 0, 0)))
        args.append(w)

    vmem_limit = _decoder_vmem_limit(bt, S, D, d_ff, num_heads,
                                     cdt.itemsize, x.dtype.itemsize, ff_block)
    return pl.pallas_call(
        kernel,
        out_shape=jax.ShapeDtypeStruct((B, S, D), x.dtype),
        grid=(B // bt, L),
        in_specs=in_specs,
        out_specs=pl.BlockSpec((bt, S, D), lambda b, l: (b, 0, 0)),
        scratch_shapes=[pltpu.VMEM((S, S), jnp.float32)],     # causal bias, built once
        compiler_params=pltpu.CompilerParams(
            dimension_semantics=("parallel", "arbitrary"),
            vmem_limit_bytes=vmem_limit),
    )(*args)


# ------------------------------- fc_out kernel --------------------------------
# Tiled over (row tiles, vocab tiles); vocab is pre-padded at prepare time to a
# lane-dense multiple of 128/512 so output stores are unmasked full-lane vst and
# no per-call weight pad/cast happens.

def fc_out_kernel(x_ref, w_ref, b_ref, o_ref):
    o_ref[...] = (jnp.dot(x_ref[...], w_ref[...],
                          preferred_element_type=jnp.float32)
                  + b_ref[...]).astype(o_ref.dtype)


def fc_out(x, w, b, *, vocab_size):
    B, S, D = x.shape
    Vp = w.shape[1]                       # already padded (multiple of 128/512)
    M = B * S
    cdt = jnp.dtype(w.dtype)

    tn = 512 if (Vp >= 512 and Vp % 512 == 0) else 128
    # Large row tiles (whole M when it fits) so the (D, V) weight is streamed
    # as few times as possible; weight HBM traffic is (Mp/tm)*D*V bytes.
    tm = _round_up(M, 8) if M <= 1024 else 512
    Mp = _round_up(M, tm)

    # activation pre-cast to the compute dtype (halves activation reads on the
    # bf16 path); row-pad only when needed.
    x2 = x.reshape(M, D).astype(cdt)
    if Mp != M:
        x2 = jnp.pad(x2, ((0, Mp - M), (0, 0)))

    vmem_limit = int(min(max(
        2 * (tm * D * cdt.itemsize + D * tn * cdt.itemsize + tn * 4
             + tm * tn * x.dtype.itemsize) + (8 << 20), 16 << 20), 128 << 20))

    out = pl.pallas_call(
        fc_out_kernel,
        out_shape=jax.ShapeDtypeStruct((Mp, Vp), x.dtype),
        grid=(Mp // tm, Vp // tn),
        in_specs=[pl.BlockSpec((tm, D), lambda i, j: (i, 0)),
                  pl.BlockSpec((D, tn), lambda i, j: (0, j)),
                  pl.BlockSpec((1, tn), lambda i, j: (0, j))],
        out_specs=pl.BlockSpec((tm, tn), lambda i, j: (i, j)),
        compiler_params=pltpu.CompilerParams(
            dimension_semantics=("parallel", "parallel"),
            vmem_limit_bytes=vmem_limit),
    )(x2, w, b)
    return out[:M, :vocab_size].reshape(B, S, vocab_size)


# ------------------------------ parameter setup -------------------------------

def init_params(key, vocab_size, d_model, num_heads, num_layers, d_ff, max_len):
    def linear(k, fan_in, fan_out):
        kw, kb = jax.random.split(k)
        bound = 1.0 / jnp.sqrt(jnp.float32(fan_in))
        w = jax.random.uniform(kw, (fan_in, fan_out), jnp.float32, -bound, bound)
        b = jax.random.uniform(kb, (1, fan_out), jnp.float32, -bound, bound)
        return w, b

    keys = jax.random.split(key, num_layers + 2)
    emb = jax.random.normal(keys[0], (vocab_size, d_model), jnp.float32)

    per_layer = []
    for l in range(num_layers):
        ks = jax.random.split(keys[1 + l], 6)
        p = {}
        p["wq"], p["bq"] = linear(ks[0], d_model, d_model)
        p["wk"], p["bk"] = linear(ks[1], d_model, d_model)
        p["wv"], p["bv"] = linear(ks[2], d_model, d_model)
        p["wo"], p["bo"] = linear(ks[3], d_model, d_model)
        p["w1"], p["b1"] = linear(ks[4], d_model, d_ff)
        p["w2"], p["b2"] = linear(ks[5], d_ff, d_model)
        p["g1"] = jnp.ones((1, d_model), jnp.float32)
        p["be1"] = jnp.zeros((1, d_model), jnp.float32)
        p["g2"] = jnp.ones((1, d_model), jnp.float32)
        p["be2"] = jnp.zeros((1, d_model), jnp.float32)
        per_layer.append(p)

    layers = {name: jnp.stack([p[name] for p in per_layer], axis=0)
              for name in _WEIGHT_ORDER}

    wout, bout = linear(keys[-1], d_model, vocab_size)

    # sinusoidal positional encoding (same formula as the PyTorch module)
    pos = jnp.arange(max_len, dtype=jnp.float32)[:, None]
    div = jnp.exp(jnp.arange(0, d_model, 2, dtype=jnp.float32)
                  * -(jnp.log(jnp.float32(10000.0)) / d_model))
    pe = jnp.zeros((max_len, d_model), jnp.float32)
    pe = pe.at[:, 0::2].set(jnp.sin(pos * div))
    pe = pe.at[:, 1::2].set(jnp.cos(pos * div))

    return {"emb": emb, "pe": pe, "layers": layers, "wout": wout, "bout": bout}


def prepare_params(params, *, num_heads, compute_dtype):
    """One-time (outside the per-step path) weight preparation:
    cast matmul weights to the compute dtype, fold 1/sqrt(hd) into wq/bq,
    pack the per-layer D-wide vectors, pre-pad fc_out to a lane-dense vocab."""
    cdt = jnp.dtype(compute_dtype)
    layers = params["layers"]
    D = layers["wq"].shape[-1]
    hd = D // num_heads
    scale = 1.0 / jnp.sqrt(jnp.float32(hd))

    prep = {
        "emb": params["emb"],
        "pe": params["pe"],
        "wq": (layers["wq"] * scale).astype(cdt),   # scale baked in (zero runtime cost)
        "wk": layers["wk"].astype(cdt),
        "wv": layers["wv"].astype(cdt),
        "wo": layers["wo"].astype(cdt),
        "w1": layers["w1"].astype(cdt),
        "w2": layers["w2"].astype(cdt),
        "b1": layers["b1"],                          # (L, 1, d_ff) f32
    }

    scaled = {"bq": layers["bq"] * scale}
    prep["vec"] = jnp.stack(
        [scaled.get(n, layers[n])[:, 0, :] for n in _VEC_ORDER], axis=1)  # (L, 9, D)

    V = params["wout"].shape[1]
    tn = 512 if V >= 512 else 128
    Vp = _round_up(V, tn)
    prep["wout"] = jnp.pad(params["wout"].astype(cdt), ((0, 0), (0, Vp - V)))
    prep["bout"] = jnp.pad(params["bout"], ((0, 0), (0, Vp - V)))
    return prep


# ------------------------------- full forward ---------------------------------

def transformer_decoder_forward(tokens, prep, *, num_heads, vocab_size):
    # TODO(synk): embedding gather + positional-encoding add stay in plain JAX;
    # a scalar-prefetch DMA-gather kernel would be needed to fold them in.
    x = prep["emb"][tokens]                          # (B, S, D) f32
    S = tokens.shape[1]
    x = x + prep["pe"][None, :S, :]
    x = decoder_stack(x, prep, num_heads=num_heads)
    return fc_out(x, prep["wout"], prep["bout"], vocab_size=vocab_size)


# ----------------------------- pure-JAX reference -----------------------------

def reference_forward(tokens, params, num_heads):
    x = params["emb"][tokens]
    B, S, D = x.shape
    hd = D // num_heads
    x = x + params["pe"][None, :S, :]
    L = params["layers"]["wq"].shape[0]
    for l in range(L):
        p = {k: v[l] for k, v in params["layers"].items()}
        q = (x @ p["wq"] + p["bq"]).reshape(B, S, num_heads, hd).transpose(0, 2, 1, 3)
        k = (x @ p["wk"] + p["bk"]).reshape(B, S, num_heads, hd).transpose(0, 2, 1, 3)
        v = (x @ p["wv"] + p["bv"]).reshape(B, S, num_heads, hd).transpose(0, 2, 1, 3)
        s = jnp.einsum("bhqd,bhkd->bhqk", q, k) / jnp.sqrt(jnp.float32(hd))
        s = jnp.tril(s)
        s = jnp.where(s == 0.0, -jnp.inf, s)
        w = _softmax_last(s)
        a = jnp.einsum("bhqk,bhkd->bhqd", w, v).transpose(0, 2, 1, 3).reshape(B, S, D)
        a = a @ p["wo"] + p["bo"]
        x = _layernorm(x + a, p["g1"], p["be1"])
        ff = jnp.maximum(x @ p["w1"] + p["b1"], 0.0) @ p["w2"] + p["b2"]
        x = _layernorm(x + ff, p["g2"], p["be2"])
    return x @ params["wout"] + params["bout"]


# ------------------------------------ main -------------------------------------

if __name__ == "__main__":
    vocab_size, d_model, num_heads, num_layers, d_ff, max_len = 64, 32, 4, 2, 64, 16
    B, S = 2, 8

    key = jax.random.PRNGKey(0)
    kp, kt = jax.random.split(key)
    params = init_params(kp, vocab_size, d_model, num_heads, num_layers, d_ff, max_len)
    tokens = jax.random.randint(kt, (B, S), 0, vocab_size, dtype=jnp.int32)

    ref = reference_forward(tokens, params, num_heads)

    fwd = jax.jit(functools.partial(transformer_decoder_forward,
                                    num_heads=num_heads, vocab_size=vocab_size))

    # exact-semantics check: f32 matmul path (weights prepared once, outside jit)
    prep_f32 = prepare_params(params, num_heads=num_heads, compute_dtype=jnp.float32)
    out_f32 = jax.block_until_ready(fwd(tokens, prep_f32))
    assert out_f32.shape == (B, S, vocab_size), out_f32.shape
    assert jnp.allclose(out_f32, ref, atol=2e-3, rtol=2e-3), \
        float(jnp.max(jnp.abs(out_f32 - ref)))

    # performance path: weights stored in bf16 (converted once) + approx recip
    prep_bf16 = prepare_params(params, num_heads=num_heads, compute_dtype=jnp.bfloat16)
    out_bf16 = jax.block_until_ready(fwd(tokens, prep_bf16))
    assert out_bf16.shape == (B, S, vocab_size), out_bf16.shape
    rel_err = float(jnp.linalg.norm(out_bf16 - ref) / jnp.linalg.norm(ref))
    assert rel_err < 0.1, rel_err

    print("KERNEL_OK")
</pallas_src>

<mosaic_0001>
module attributes {stable_mosaic.version = 11 : i64} {
  func.func @fc_out_kernel(%arg0: i32, %arg1: i32, %arg2: memref<16x32xf32, #tpu.memory_space<vmem>>, %arg3: memref<32x128xf32, #tpu.memory_space<vmem>>, %arg4: memref<1x128xf32, #tpu.memory_space<vmem>>, %arg5: memref<16x128xf32, #tpu.memory_space<vmem>>) attributes {dimension_semantics = [#tpu.dimension_semantics<parallel>, #tpu.dimension_semantics<parallel>], iteration_bounds = array<i64: 1, 1>, scalar_prefetch = 0 : i64, scratch_operands = 0 : i64, tpu.core_type = #tpu.core_type<tc>, window_params = [{transform_indices = @transform_0, window_bounds = array<i64: 16, 32>}, {transform_indices = @transform_1, window_bounds = array<i64: 32, 128>}, {transform_indices = @transform_2, window_bounds = array<i64: 1, 128>}, {transform_indices = @transform_3, window_bounds = array<i64: 16, 128>}]} {
    %c0 = arith.constant 0 : index
    %c0_0 = arith.constant 0 : index
    %0 = vector.load %arg2[%c0, %c0_0] : memref<16x32xf32, #tpu.memory_space<vmem>>, vector<16x32xf32>
    %c0_1 = arith.constant 0 : index
    %c0_2 = arith.constant 0 : index
    %1 = vector.load %arg3[%c0_1, %c0_2] : memref<32x128xf32, #tpu.memory_space<vmem>>, vector<32x128xf32>
    %cst = arith.constant dense<0.000000e+00> : vector<16x128xf32>
    %2 = tpu.matmul %0, %1, %cst {dimension_numbers = #tpu.dot_dimension_numbers<[1], [0], [0], [1], [0, 0, 1, 1], [], []>} : vector<16x32xf32>, vector<32x128xf32>, vector<16x128xf32> -> vector<16x128xf32>
    %c0_3 = arith.constant 0 : index
    %c0_4 = arith.constant 0 : index
    %3 = vector.load %arg4[%c0_3, %c0_4] : memref<1x128xf32, #tpu.memory_space<vmem>>, vector<1x128xf32>
    %4 = vector.broadcast %3 : vector<1x128xf32> to vector<16x128xf32>
    %5 = arith.addf %2, %4 : vector<16x128xf32>
    %c0_5 = arith.constant 0 : index
    %c0_6 = arith.constant 0 : index
    %6 = vector.load %arg5[%c0_5, %c0_6] : memref<16x128xf32, #tpu.memory_space<vmem>>, vector<16x128xf32>
    tpu.vector_store %arg5[%c0_5, %c0_6], %5 {strides = array<i32>} : memref<16x128xf32, #tpu.memory_space<vmem>>, vector<16x128xf32>,
    return
  }
  func.func @transform_0(%arg0: i32, %arg1: i32) -> (i32, i32) {
    %c0_i32 = arith.constant 0 : i32
    %c0_i32_0 = arith.constant 0 : i32
    return %arg0, %c0_i32 : i32, i32
  }
  func.func @transform_1(%arg0: i32, %arg1: i32) -> (i32, i32) {
    %c0_i32 = arith.constant 0 : i32
    %c0_i32_0 = arith.constant 0 : i32
    return %c0_i32, %arg1 : i32, i32
  }
  func.func @transform_2(%arg0: i32, %arg1: i32) -> (i32, i32) {
    %c0_i32 = arith.constant 0 : i32
    %c0_i32_0 = arith.constant 0 : i32
    return %c0_i32, %arg1 : i32, i32
  }
  func.func @transform_3(%arg0: i32, %arg1: i32) -> (i32, i32) {
    %c0_i32 = arith.constant 0 : i32
    return %arg0, %arg1 : i32, i32
  }
}

module attributes {stable_mosaic.version = 11 : i64} {
  func.func @decoder_stack_kernel(%arg0: i32, %arg1: i32, %arg2: memref<2x8x32xf32, #tpu.memory_space<vmem>>, %arg3: memref<1x32x32xf32, #tpu.memory_space<vmem>>, %arg4: memref<1x32x32xf32, #tpu.memory_space<vmem>>, %arg5: memref<1x32x32xf32, #tpu.memory_space<vmem>>, %arg6: memref<1x32x32xf32, #tpu.memory_space<vmem>>, %arg7: memref<1x32x64xf32, #tpu.memory_space<vmem>>, %arg8: memref<1x64x32xf32, #tpu.memory_space<vmem>>, %arg9: memref<1x1x64xf32, #tpu.memory_space<vmem>>, %arg10: memref<1x9x32xf32, #tpu.memory_space<vmem>>, %arg11: memref<2x8x32xf32, #tpu.memory_space<vmem>>, %arg12: memref<8x8xf32, #tpu.memory_space<vmem>>) attributes {dimension_semantics = [#tpu.dimension_semantics<parallel>, #tpu.dimension_semantics<arbitrary>], iteration_bounds = array<i64: 1, 2>, scalar_prefetch = 0 : i64, scratch_operands = 1 : i64, tpu.core_type = #tpu.core_type<tc>, window_params = [{transform_indices = @transform_0, window_bounds = array<i64: 2, 8, 32>}, {transform_indices = @transform_1, window_bounds = array<i64: 1, 32, 32>}, {transform_indices = @transform_2, window_bounds = array<i64: 1, 32, 32>}, {transform_indices = @transform_3, window_bounds = array<i64: 1, 32, 32>}, {transform_indices = @transform_4, window_bounds = array<i64: 1, 32, 32>}, {transform_indices = @transform_5, window_bounds = array<i64: 1, 32, 64>}, {transform_indices = @transform_6, window_bounds = array<i64: 1, 64, 32>}, {transform_indices = @transform_7, window_bounds = array<i64: 1, 1, 64>}, {transform_indices = @transform_8, window_bounds = array<i64: 1, 9, 32>}, {transform_indices = @transform_9, window_bounds = array<i64: 2, 8, 32>}]} {
    %c0_i32 = arith.constant 0 : i32
    %0 = arith.cmpi eq, %arg1, %c0_i32 : i32
    %1 = arith.extui %0 : i1 to i32
    %c0_i32_0 = arith.constant 0 : i32
    %2 = arith.cmpi ne, %1, %c0_i32_0 : i32
    scf.if %2 {
      %c0_55 = arith.constant 0 : index
      %c0_56 = arith.constant 0 : index
      %c0_57 = arith.constant 0 : index
      %155 = vector.load %arg2[%c0_55, %c0_56, %c0_57] : memref<2x8x32xf32, #tpu.memory_space<vmem>>, vector<2x8x32xf32>
      %c0_58 = arith.constant 0 : index
      %c0_59 = arith.constant 0 : index
      %c0_60 = arith.constant 0 : index
      %156 = vector.load %arg11[%c0_58, %c0_59, %c0_60] : memref<2x8x32xf32, #tpu.memory_space<vmem>>, vector<2x8x32xf32>
      tpu.vector_store %arg11[%c0_58, %c0_59, %c0_60], %155 {strides = array<i32>} : memref<2x8x32xf32, #tpu.memory_space<vmem>>, vector<2x8x32xf32>,
      %157 = tpu.iota {dimensions = array<i32: 0>} : vector<8x8xi32>
      %158 = tpu.iota {dimensions = array<i32: 1>} : vector<8x8xi32>
      %159 = arith.cmpi sgt, %158, %157 : vector<8x8xi32>
      %cst_61 = arith.constant 0xFF800000 : f32
      %cst_62 = arith.constant 0.000000e+00 : f32
      %160 = vector.broadcast %cst_61 : f32 to vector<8x8xf32>
      %161 = vector.broadcast %cst_62 : f32 to vector<8x8xf32>
      %162 = arith.select %159, %160, %161 : vector<8x8xi1>, vector<8x8xf32>
      %c0_63 = arith.constant 0 : index
      %c0_64 = arith.constant 0 : index
      %163 = vector.load %arg12[%c0_63, %c0_64] : memref<8x8xf32, #tpu.memory_space<vmem>>, vector<8x8xf32>
      tpu.vector_store %arg12[%c0_63, %c0_64], %162 {strides = array<i32>} : memref<8x8xf32, #tpu.memory_space<vmem>>, vector<8x8xf32>,
    } else {
    }
    %c0 = arith.constant 0 : index
    %c0_1 = arith.constant 0 : index
    %c0_2 = arith.constant 0 : index
    %3 = vector.load %arg11[%c0, %c0_1, %c0_2] : memref<2x8x32xf32, #tpu.memory_space<vmem>>, vector<2x8x32xf32>
    %4 = vector.shape_cast %3 : vector<2x8x32xf32> to vector<16x32xf32>
    %c0_3 = arith.constant 0 : index
    %c0_4 = arith.constant 0 : index
    %c0_5 = arith.constant 0 : index
    %5 = vector.load %arg10[%c0_3, %c0_4, %c0_5] : memref<1x9x32xf32, #tpu.memory_space<vmem>>, vector<1x9x32xf32>
    %6 = vector.shape_cast %5 : vector<1x9x32xf32> to vector<9x32xf32>
    %7 = vector.extract_strided_slice %6 {offsets = [0, 0], sizes = [1, 32], strides = [1, 1]} : vector<9x32xf32> to vector<1x32xf32>
    %8 = vector.extract_strided_slice %6 {offsets = [1, 0], sizes = [1, 32], strides = [1, 1]} : vector<9x32xf32> to vector<1x32xf32>
    %9 = vector.extract_strided_slice %6 {offsets = [2, 0], sizes = [1, 32], strides = [1, 1]} : vector<9x32xf32> to vector<1x32xf32>
    %10 = vector.extract_strided_slice %6 {offsets = [3, 0], sizes = [1, 32], strides = [1, 1]} : vector<9x32xf32> to vector<1x32xf32>
    %11 = vector.extract_strided_slice %6 {offsets = [4, 0], sizes = [1, 32], strides = [1, 1]} : vector<9x32xf32> to vector<1x32xf32>
    %12 = vector.extract_strided_slice %6 {offsets = [5, 0], sizes = [1, 32], strides = [1, 1]} : vector<9x32xf32> to vector<1x32xf32>
    %13 = vector.extract_strided_slice %6 {offsets = [6, 0], sizes = [1, 32], strides = [1, 1]} : vector<9x32xf32> to vector<1x32xf32>
    %14 = vector.extract_strided_slice %6 {offsets = [7, 0], sizes = [1, 32], strides = [1, 1]} : vector<9x32xf32> to vector<1x32xf32>
    %15 = vector.extract_strided_slice %6 {offsets = [8, 0], sizes = [1, 32], strides = [1, 1]} : vector<9x32xf32> to vector<1x32xf32>
    %c0_6 = arith.constant 0 : index
    %c0_7 = arith.constant 0 : index
    %c0_8 = arith.constant 0 : index
    %16 = vector.load %arg3[%c0_6, %c0_7, %c0_8] : memref<1x32x32xf32, #tpu.memory_space<vmem>>, vector<1x32x32xf32>
    %17 = vector.shape_cast %16 : vector<1x32x32xf32> to vector<32x32xf32>
    %cst = arith.constant dense<0.000000e+00> : vector<16x32xf32>
    %18 = tpu.matmul %4, %17, %cst {dimension_numbers = #tpu.dot_dimension_numbers<[1], [0], [0], [1], [0, 0, 1, 1], [], []>} : vector<16x32xf32>, vector<32x32xf32>, vector<16x32xf32> -> vector<16x32xf32>
    %19 = vector.broadcast %7 : vector<1x32xf32> to vector<16x32xf32>
    %20 = arith.addf %18, %19 : vector<16x32xf32>
    %c0_9 = arith.constant 0 : index
    %c0_10 = arith.constant 0 : index
    %c0_11 = arith.constant 0 : index
    %21 = vector.load %arg4[%c0_9, %c0_10, %c0_11] : memref<1x32x32xf32, #tpu.memory_space<vmem>>, vector<1x32x32xf32>
    %22 = vector.shape_cast %21 : vector<1x32x32xf32> to vector<32x32xf32>
    %cst_12 = arith.constant dense<0.000000e+00> : vector<16x32xf32>
    %23 = tpu.matmul %4, %22, %cst_12 {dimension_numbers = #tpu.dot_dimension_numbers<[1], [0], [0], [1], [0, 0, 1, 1], [], []>} : vector<16x32xf32>, vector<32x32xf32>, vector<16x32xf32> -> vector<16x32xf32>
    %24 = vector.broadcast %8 : vector<1x32xf32> to vector<16x32xf32>
    %25 = arith.addf %23, %24 : vector<16x32xf32>
    %c0_13 = arith.constant 0 : index
    %c0_14 = arith.constant 0 : index
    %c0_15 = arith.constant 0 : index
    %26 = vector.load %arg5[%c0_13, %c0_14, %c0_15] : memref<1x32x32xf32, #tpu.memory_space<vmem>>, vector<1x32x32xf32>
    %27 = vector.shape_cast %26 : vector<1x32x32xf32> to vector<32x32xf32>
    %cst_16 = arith.constant dense<0.000000e+00> : vector<16x32xf32>
    %28 = tpu.matmul %4, %27, %cst_16 {dimension_numbers = #tpu.dot_dimension_numbers<[1], [0], [0], [1], [0, 0, 1, 1], [], []>} : vector<16x32xf32>, vector<32x32xf32>, vector<16x32xf32> -> vector<16x32xf32>
    %29 = vector.broadcast %9 : vector<1x32xf32> to vector<16x32xf32>
    %30 = arith.addf %28, %29 : vector<16x32xf32>
    %31 = vector.extract_strided_slice %20 {offsets = [0, 0], sizes = [16, 8], strides = [1, 1]} : vector<16x32xf32> to vector<16x8xf32>
    %32 = vector.shape_cast %31 : vector<16x8xf32> to vector<2x8x8xf32>
    %33 = vector.extract_strided_slice %20 {offsets = [0, 8], sizes = [16, 8], strides = [1, 1]} : vector<16x32xf32> to vector<16x8xf32>
    %34 = vector.shape_cast %33 : vector<16x8xf32> to vector<2x8x8xf32>
    %35 = vector.extract_strided_slice %20 {offsets = [0, 16], sizes = [16, 8], strides = [1, 1]} : vector<16x32xf32> to vector<16x8xf32>
    %36 = vector.shape_cast %35 : vector<16x8xf32> to vector<2x8x8xf32>
    %37 = vector.extract_strided_slice %20 {offsets = [0, 24], sizes = [16, 8], strides = [1, 1]} : vector<16x32xf32> to vector<16x8xf32>
    %38 = vector.shape_cast %37 : vector<16x8xf32> to vector<2x8x8xf32>
    %39 = tpu.concatenate %32, %34, %36, %38 in 0 : vector<2x8x8xf32>, vector<2x8x8xf32>, vector<2x8x8xf32>, vector<2x8x8xf32> -> vector<8x8x8xf32>
    %40 = vector.extract_strided_slice %25 {offsets = [0, 0], sizes = [16, 8], strides = [1, 1]} : vector<16x32xf32> to vector<16x8xf32>
    %41 = vector.shape_cast %40 : vector<16x8xf32> to vector<2x8x8xf32>
    %42 = vector.extract_strided_slice %25 {offsets = [0, 8], sizes = [16, 8], strides = [1, 1]} : vector<16x32xf32> to vector<16x8xf32>
    %43 = vector.shape_cast %42 : vector<16x8xf32> to vector<2x8x8xf32>
    %44 = vector.extract_strided_slice %25 {offsets = [0, 16], sizes = [16, 8], strides = [1, 1]} : vector<16x32xf32> to vector<16x8xf32>
    %45 = vector.shape_cast %44 : vector<16x8xf32> to vector<2x8x8xf32>
    %46 = vector.extract_strided_slice %25 {offsets = [0, 24], sizes = [16, 8], strides = [1, 1]} : vector<16x32xf32> to vector<16x8xf32>
    %47 = vector.shape_cast %46 : vector<16x8xf32> to vector<2x8x8xf32>
    %48 = tpu.concatenate %41, %43, %45, %47 in 0 : vector<2x8x8xf32>, vector<2x8x8xf32>, vector<2x8x8xf32>, vector<2x8x8xf32> -> vector<8x8x8xf32>
    %49 = vector.extract_strided_slice %30 {offsets = [0, 0], sizes = [16, 8], strides = [1, 1]} : vector<16x32xf32> to vector<16x8xf32>
    %50 = vector.shape_cast %49 : vector<16x8xf32> to vector<2x8x8xf32>
    %51 = vector.extract_strided_slice %30 {offsets = [0, 8], sizes = [16, 8], strides = [1, 1]} : vector<16x32xf32> to vector<16x8xf32>
    %52 = vector.shape_cast %51 : vector<16x8xf32> to vector<2x8x8xf32>
    %53 = vector.extract_strided_slice %30 {offsets = [0, 16], sizes = [16, 8], strides = [1, 1]} : vector<16x32xf32> to vector<16x8xf32>
    %54 = vector.shape_cast %53 : vector<16x8xf32> to vector<2x8x8xf32>
    %55 = vector.extract_strided_slice %30 {offsets = [0, 24], sizes = [16, 8], strides = [1, 1]} : vector<16x32xf32> to vector<16x8xf32>
    %56 = vector.shape_cast %55 : vector<16x8xf32> to vector<2x8x8xf32>
    %57 = tpu.concatenate %50, %52, %54, %56 in 0 : vector<2x8x8xf32>, vector<2x8x8xf32>, vector<2x8x8xf32>, vector<2x8x8xf32> -> vector<8x8x8xf32>
    "tpu.trace_start"() <{level = 10 : i32, message = "bqd,bkd->bqk"}> : () -> ()
    %cst_17 = arith.constant dense<0.000000e+00> : vector<8x8x8xf32>
    %58 = tpu.matmul %39, %48, %cst_17 {dimension_numbers = #tpu.dot_dimension_numbers<[2], [2], [1], [1], [0, 0, 0, 1, 1, 1], [0], [0]>} : vector<8x8x8xf32>, vector<8x8x8xf32>, vector<8x8x8xf32> -> vector<8x8x8xf32>
    "tpu.trace_stop"() : () -> ()
    %c0_18 = arith.constant 0 : index
    %c0_19 = arith.constant 0 : index
    %59 = vector.load %arg12[%c0_18, %c0_19] : memref<8x8xf32, #tpu.memory_space<vmem>>, vector<8x8xf32>
    %60 = vector.shape_cast %59 : vector<8x8xf32> to vector<1x8x8xf32>
    %61 = vector.broadcast %60 : vector<1x8x8xf32> to vector<8x8x8xf32>
    %62 = arith.addf %58, %61 : vector<8x8x8xf32>
    %cst_20 = arith.constant 0.000000e+00 : f32
    %63 = vector.broadcast %cst_20 : f32 to vector<8x8x8xf32>
    %64 = arith.cmpf oeq, %62, %63 : vector<8x8x8xf32>
    %cst_21 = arith.constant 0xFF800000 : f32
    %65 = vector.broadcast %cst_21 : f32 to vector<8x8x8xf32>
    %66 = arith.select %64, %65, %62 : vector<8x8x8xi1>, vector<8x8x8xf32>
    %cst_22 = arith.constant dense<0xFF800000> : vector<8x8xf32>
    %67 = vector.multi_reduction <maximumf>, %66, %cst_22 [2] : vector<8x8x8xf32> to vector<8x8xf32>
    %68 = vector.shape_cast %67 : vector<8x8xf32> to vector<8x8x1xf32>
    %69 = vector.broadcast %68 : vector<8x8x1xf32> to vector<8x8x8xf32>
    %70 = arith.subf %66, %69 : vector<8x8x8xf32>
    %71 = math.exp %70 : vector<8x8x8xf32>
    %cst_23 = arith.constant dense<0.000000e+00> : vector<8x8xf32>
    %72 = vector.multi_reduction <add>, %71, %cst_23 [2] : vector<8x8x8xf32> to vector<8x8xf32>
    %73 = vector.shape_cast %72 : vector<8x8xf32> to vector<8x8x1xf32>
    %74 = vector.broadcast %73 : vector<8x8x1xf32> to vector<8x8x8xf32>
    %75 = arith.divf %71, %74 : vector<8x8x8xf32>
    "tpu.trace_start"() <{level = 10 : i32, message = "bqk,bkd->bqd"}> : () -> ()
    %cst_24 = arith.constant dense<0.000000e+00> : vector<8x8x8xf32>
    %76 = tpu.matmul %75, %57, %cst_24 {dimension_numbers = #tpu.dot_dimension_numbers<[2], [1], [1], [2], [0, 0, 0, 1, 1, 2], [0], [0]>} : vector<8x8x8xf32>, vector<8x8x8xf32>, vector<8x8x8xf32> -> vector<8x8x8xf32>
    "tpu.trace_stop"() : () -> ()
    %77 = vector.extract_strided_slice %76 {offsets = [0, 0, 0], sizes = [2, 8, 8], strides = [1, 1, 1]} : vector<8x8x8xf32> to vector<2x8x8xf32>
    %78 = vector.shape_cast %77 : vector<2x8x8xf32> to vector<16x8xf32>
    %79 = vector.extract_strided_slice %76 {offsets = [2, 0, 0], sizes = [2, 8, 8], strides = [1, 1, 1]} : vector<8x8x8xf32> to vector<2x8x8xf32>
    %80 = vector.shape_cast %79 : vector<2x8x8xf32> to vector<16x8xf32>
    %81 = vector.extract_strided_slice %76 {offsets = [4, 0, 0], sizes = [2, 8, 8], strides = [1, 1, 1]} : vector<8x8x8xf32> to vector<2x8x8xf32>
    %82 = vector.shape_cast %81 : vector<2x8x8xf32> to vector<16x8xf32>
    %83 = vector.extract_strided_slice %76 {offsets = [6, 0, 0], sizes = [2, 8, 8], strides = [1, 1, 1]} : vector<8x8x8xf32> to vector<2x8x8xf32>
    %84 = vector.shape_cast %83 : vector<2x8x8xf32> to vector<16x8xf32>
    %85 = tpu.concatenate %78, %80, %82, %84 in 1 : vector<16x8xf32>, vector<16x8xf32>, vector<16x8xf32>, vector<16x8xf32> -> vector<16x32xf32>
    %c0_25 = arith.constant 0 : index
    %c0_26 = arith.constant 0 : index
    %c0_27 = arith.constant 0 : index
    %86 = vector.load %arg6[%c0_25, %c0_26, %c0_27] : memref<1x32x32xf32, #tpu.memory_space<vmem>>, vector<1x32x32xf32>
    %87 = vector.shape_cast %86 : vector<1x32x32xf32> to vector<32x32xf32>
    %cst_28 = arith.constant dense<0.000000e+00> : vector<16x32xf32>
    %88 = tpu.matmul %85, %87, %cst_28 {dimension_numbers = #tpu.dot_dimension_numbers<[1], [0], [0], [1], [0, 0, 1, 1], [], []>} : vector<16x32xf32>, vector<32x32xf32>, vector<16x32xf32> -> vector<16x32xf32>
    %89 = vector.broadcast %10 : vector<1x32xf32> to vector<16x32xf32>
    %90 = arith.addf %88, %89 : vector<16x32xf32>
    %91 = arith.addf %4, %90 : vector<16x32xf32>
    %cst_29 = arith.constant dense<0.000000e+00> : vector<16xf32>
    %92 = vector.multi_reduction <add>, %91, %cst_29 [1] : vector<16x32xf32> to vector<16xf32>
    %93 = vector.shape_cast %92 : vector<16xf32> to vector<16x1xf32>
    %cst_30 = arith.constant 3.200000e+01 : f32
    %94 = vector.broadcast %cst_30 : f32 to vector<16x1xf32>
    %95 = arith.divf %93, %94 : vector<16x1xf32>
    %96 = vector.broadcast %95 : vector<16x1xf32> to vector<16x32xf32>
    %97 = arith.subf %91, %96 : vector<16x32xf32>
    %98 = arith.mulf %97, %97 : vector<16x32xf32>
    %cst_31 = arith.constant dense<0.000000e+00> : vector<16xf32>
    %99 = vector.multi_reduction <add>, %98, %cst_31 [1] : vector<16x32xf32> to vector<16xf32>
    %100 = vector.shape_cast %99 : vector<16xf32> to vector<16x1xf32>
    %cst_32 = arith.constant 3.200000e+01 : f32
    %101 = vector.broadcast %cst_32 : f32 to vector<16x1xf32>
    %102 = arith.divf %100, %101 : vector<16x1xf32>
    %103 = vector.broadcast %95 : vector<16x1xf32> to vector<16x32xf32>
    %104 = arith.subf %91, %103 : vector<16x32xf32>
    %cst_33 = arith.constant 9.99999974E-6 : f32
    %105 = vector.broadcast %cst_33 : f32 to vector<16x1xf32>
    %106 = arith.addf %102, %105 : vector<16x1xf32>
    %107 = math.rsqrt %106 : vector<16x1xf32>
    %108 = vector.broadcast %107 : vector<16x1xf32> to vector<16x32xf32>
    %109 = arith.mulf %104, %108 : vector<16x32xf32>
    %110 = vector.broadcast %11 : vector<1x32xf32> to vector<16x32xf32>
    %111 = arith.mulf %109, %110 : vector<16x32xf32>
    %112 = vector.broadcast %12 : vector<1x32xf32> to vector<16x32xf32>
    %113 = arith.addf %111, %112 : vector<16x32xf32>
    %cst_34 = arith.constant 0.000000e+00 : f32
    %114 = vector.broadcast %cst_34 : f32 to vector<16x32xf32>
    %c0_35 = arith.constant 0 : index
    %c0_36 = arith.constant 0 : index
    %c0_37 = arith.constant 0 : index
    %115 = vector.load %arg7[%c0_35, %c0_36, %c0_37] : memref<1x32x64xf32, #tpu.memory_space<vmem>>, vector<1x32x64xf32>
    %116 = vector.shape_cast %115 : vector<1x32x64xf32> to vector<32x64xf32>
    %cst_38 = arith.constant dense<0.000000e+00> : vector<16x64xf32>
    %117 = tpu.matmul %113, %116, %cst_38 {dimension_numbers = #tpu.dot_dimension_numbers<[1], [0], [0], [1], [0, 0, 1, 1], [], []>} : vector<16x32xf32>, vector<32x64xf32>, vector<16x64xf32> -> vector<16x64xf32>
    %c0_39 = arith.constant 0 : index
    %c0_40 = arith.constant 0 : index
    %c0_41 = arith.constant 0 : index
    %118 = vector.load %arg9[%c0_39, %c0_40, %c0_41] : memref<1x1x64xf32, #tpu.memory_space<vmem>>, vector<1x1x64xf32>
    %119 = vector.shape_cast %118 : vector<1x1x64xf32> to vector<1x64xf32>
    %120 = vector.broadcast %119 : vector<1x64xf32> to vector<16x64xf32>
    %121 = arith.addf %117, %120 : vector<16x64xf32>
    %cst_42 = arith.constant 0.000000e+00 : f32
    %122 = vector.broadcast %cst_42 : f32 to vector<16x64xf32>
    %123 = arith.maximumf %121, %122 : vector<16x64xf32>
    %c0_43 = arith.constant 0 : index
    %c0_44 = arith.constant 0 : index
    %c0_45 = arith.constant 0 : index
    %124 = vector.load %arg8[%c0_43, %c0_44, %c0_45] : memref<1x64x32xf32, #tpu.memory_space<vmem>>, vector<1x64x32xf32>
    %125 = vector.shape_cast %124 : vector<1x64x32xf32> to vector<64x32xf32>
    %cst_46 = arith.constant dense<0.000000e+00> : vector<16x32xf32>
    %126 = tpu.matmul %123, %125, %cst_46 {dimension_numbers = #tpu.dot_dimension_numbers<[1], [0], [0], [1], [0, 0, 1, 1], [], []>} : vector<16x64xf32>, vector<64x32xf32>, vector<16x32xf32> -> vector<16x32xf32>
    %127 = arith.addf %114, %126 : vector<16x32xf32>
    %128 = vector.broadcast %15 : vector<1x32xf32> to vector<16x32xf32>
    %129 = arith.addf %127, %128 : vector<16x32xf32>
    %130 = arith.addf %113, %129 : vector<16x32xf32>
    %cst_47 = arith.constant dense<0.000000e+00> : vector<16xf32>
    %131 = vector.multi_reduction <add>, %130, %cst_47 [1] : vector<16x32xf32> to vector<16xf32>
    %132 = vector.shape_cast %131 : vector<16xf32> to vector<16x1xf32>
    %cst_48 = arith.constant 3.200000e+01 : f32
    %133 = vector.broadcast %cst_48 : f32 to vector<16x1xf32>
    %134 = arith.divf %132, %133 : vector<16x1xf32>
    %135 = vector.broadcast %134 : vector<16x1xf32> to vector<16x32xf32>
    %136 = arith.subf %130, %135 : vector<16x32xf32>
    %137 = arith.mulf %136, %136 : vector<16x32xf32>
    %cst_49 = arith.constant dense<0.000000e+00> : vector<16xf32>
    %138 = vector.multi_reduction <add>, %137, %cst_49 [1] : vector<16x32xf32> to vector<16xf32>
    %139 = vector.shape_cast %138 : vector<16xf32> to vector<16x1xf32>
    %cst_50 = arith.constant 3.200000e+01 : f32
    %140 = vector.broadcast %cst_50 : f32 to vector<16x1xf32>
    %141 = arith.divf %139, %140 : vector<16x1xf32>
    %142 = vector.broadcast %134 : vector<16x1xf32> to vector<16x32xf32>
    %143 = arith.subf %130, %142 : vector<16x32xf32>
    %cst_51 = arith.constant 9.99999974E-6 : f32
    %144 = vector.broadcast %cst_51 : f32 to vector<16x1xf32>
    %145 = arith.addf %141, %144 : vector<16x1xf32>
    %146 = math.rsqrt %145 : vector<16x1xf32>
    %147 = vector.broadcast %146 : vector<16x1xf32> to vector<16x32xf32>
    %148 = arith.mulf %143, %147 : vector<16x32xf32>
    %149 = vector.broadcast %13 : vector<1x32xf32> to vector<16x32xf32>
    %150 = arith.mulf %148, %149 : vector<16x32xf32>
    %151 = vector.broadcast %14 : vector<1x32xf32> to vector<16x32xf32>
    %152 = arith.addf %150, %151 : vector<16x32xf32>
    %153 = vector.shape_cast %152 : vector<16x32xf32> to vector<2x8x32xf32>
    %c0_52 = arith.constant 0 : index
    %c0_53 = arith.constant 0 : index
    %c0_54 = arith.constant 0 : index
    %154 = vector.load %arg11[%c0_52, %c0_53, %c0_54] : memref<2x8x32xf32, #tpu.memory_space<vmem>>, vector<2x8x32xf32>
    tpu.vector_store %arg11[%c0_52, %c0_53, %c0_54], %153 {strides = array<i32>} : memref<2x8x32xf32, #tpu.memory_space<vmem>>, vector<2x8x32xf32>,
    return
  }
  func.func @transform_0(%arg0: i32, %arg1: i32) -> (i32, i32, i32) {
    %c0_i32 = arith.constant 0 : i32
    %c0_i32_0 = arith.constant 0 : i32
    %c0_i32_1 = arith.constant 0 : i32
    return %arg0, %c0_i32, %c0_i32_0 : i32, i32, i32
  }
  func.func @transform_1(%arg0: i32, %arg1: i32) -> (i32, i32, i32) {
    %c0_i32 = arith.constant 0 : i32
    %c0_i32_0 = arith.constant 0 : i32
    %c0_i32_1 = arith.constant 0 : i32
    return %arg1, %c0_i32, %c0_i32_0 : i32, i32, i32
  }
  func.func @transform_2(%arg0: i32, %arg1: i32) -> (i32, i32, i32) {
    %c0_i32 = arith.constant 0 : i32
    %c0_i32_0 = arith.constant 0 : i32
    %c0_i32_1 = arith.constant 0 : i32
    return %arg1, %c0_i32, %c0_i32_0 : i32, i32, i32
  }
  func.func @transform_3(%arg0: i32, %arg1: i32) -> (i32, i32, i32) {
    %c0_i32 = arith.constant 0 : i32
    %c0_i32_0 = arith.constant 0 : i32
    %c0_i32_1 = arith.constant 0 : i32
    return %arg1, %c0_i32, %c0_i32_0 : i32, i32, i32
  }
  func.func @transform_4(%arg0: i32, %arg1: i32) -> (i32, i32, i32) {
    %c0_i32 = arith.constant 0 : i32
    %c0_i32_0 = arith.constant 0 : i32
    %c0_i32_1 = arith.constant 0 : i32
    return %arg1, %c0_i32, %c0_i32_0 : i32, i32, i32
  }
  func.func @transform_5(%arg0: i32, %arg1: i32) -> (i32, i32, i32) {
    %c0_i32 = arith.constant 0 : i32
    %c0_i32_0 = arith.constant 0 : i32
    %c0_i32_1 = arith.constant 0 : i32
    return %arg1, %c0_i32, %c0_i32_0 : i32, i32, i32
  }
  func.func @transform_6(%arg0: i32, %arg1: i32) -> (i32, i32, i32) {
    %c0_i32 = arith.constant 0 : i32
    %c0_i32_0 = arith.constant 0 : i32
    %c0_i32_1 = arith.constant 0 : i32
    return %arg1, %c0_i32, %c0_i32_0 : i32, i32, i32
  }
  func.func @transform_7(%arg0: i32, %arg1: i32) -> (i32, i32, i32) {
    %c0_i32 = arith.constant 0 : i32
    %c0_i32_0 = arith.constant 0 : i32
    %c0_i32_1 = arith.constant 0 : i32
    return %arg1, %c0_i32, %c0_i32_0 : i32, i32, i32
  }
  func.func @transform_8(%arg0: i32, %arg1: i32) -> (i32, i32, i32) {
    %c0_i32 = arith.constant 0 : i32
    %c0_i32_0 = arith.constant 0 : i32
    %c0_i32_1 = arith.constant 0 : i32
    return %arg1, %c0_i32, %c0_i32_0 : i32, i32, i32
  }
  func.func @transform_9(%arg0: i32, %arg1: i32) -> (i32, i32, i32) {
    %c0_i32 = arith.constant 0 : i32
    %c0_i32_0 = arith.constant 0 : i32
    %c0_i32_1 = arith.constant 0 : i32
    return %arg0, %c0_i32, %c0_i32_0 : i32, i32, i32
  }
}

</mosaic_0001>

<bundles_post_ra>
// kernel: transformer_decoder_forward.3
= control target key start
LH: loop header
LB: loop body
LE: loop exit
PB: predicated region body
PF: predicated region fallthrough
CT: control target
= control target key end

     0   :  { %vm27_vm0 = vcmask 261120   ;;  %s184_s1 = inlined_call_operand.vmem [shape: f32[32,128], index: 1, kind: input, shape index: {}]   ;;  %s185_s0 = inlined_call_operand.vmem [shape: f32[16,32], index: 0, kind: input, shape index: {}]   ;;  %s186_s2 = inlined_call_operand.vmem [shape: f32[1,128], index: 2, kind: input, shape index: {}]   ;;  %s187_s3 = inlined_call_operand.vmem [shape: f32[16,128], index: 3, kind: output, shape index: {}]  }
   0x1   :  { %v19_v0 = vld [vmem:[%s184_s1 + $0x18] sm:$0xff]  ;;  %v18_v1 = vld [vmem:[%s184_s1 + $0x10] sm:$0xff]  ;;  %v14_v2 = vld [vmem:[%s185_s0] sm:$0xff] }
   0x2   :  { %124 = vmatprep.subr.mxu0 %v19_v0  ;;  %v17_v3 = vld [vmem:[%s184_s1 + $0x8] sm:$0xff]  ;;  %132 = vmatprep.mubr.msk.f32.mxu0 %vm27_vm0, %v14_v2  ;;  %v16_v4 = vld [vmem:[%s184_s1] sm:$0xff] }
   0x3   :  { %125 = vmatpush3.msra.mxu0 %v19_v0  ;;  %v15_v5 = vld [vmem:[%s185_s0 + $0x8] sm:$0xff]  ;;  %v115_v6 = vld [vmem:[%s186_s2] ss:$0 sm:$0xff] }
   0x4   :  { %126 = vmatprep.subr.mxu0 %v18_v1 }
   0x5   :  { %127 = vmatpush3.msra.mxu0 %v18_v1 }
   0x6   :  { %128 = vmatprep.subr.mxu0 %v17_v3 }
   0x7   :  { %129 = vmatpush3.msra.mxu0 %v17_v3 }
   0x8   :  { %130 = vmatprep.subr.mxu0 %v16_v4 }
   0x9   :  { %131 = vmatpush3.msra.mxu0 %v16_v4 }
   0xa   :  { %133 = vmatmul.mubr.msk.f32.vlgmr.msra.gmra.mxu0 %vm27_vm0, %v15_v5 }
  0xca   :  { %v134_v7 = vpop.f32.mrf.mxu0 }
  0xcb   :  { %v106_v8 = vadd.f32 %v134_v7, %v115_v6 }
  0xcc   :  { %v100_v9 = vpop.f32.mrf.mxu0 }
  0xcd   :  { %110 = vst [vmem:[%s187_s3 + $0x8] sm:$0xff] %v106_v8  ;;  %v101_v10 = vadd.f32 %v115_v6, %v100_v9 }
  0xcf   :  { %109 = vst [vmem:[%s187_s3] sm:$0xff] %v101_v10 }

// kernel: transformer_decoder_forward.2
= control target key start
LH: loop header
LB: loop body
LE: loop exit
PB: predicated region body
PF: predicated region fallthrough
CT: control target
= control target key end

     0   :  { %s3110_s30 = smov 0   ;;  %s3112_s10 = smov 0   ;;  %s3420_s0 = inlined_call_operand.vmem [shape: f32[2,8,32], index: 0, kind: input, shape index: {}]   ;;  %s3421_s1 = inlined_call_operand.vmem [shape: f32[2,32,32], index: 1, kind: input, shape index: {}]   ;;  %s3422_s2 = inlined_call_operand.vmem [shape: f32[2,32,32], index: 2, kind: input, shape index: {}]   ;;  %s3423_s3 = inlined_call_operand.vmem [shape: f32[2,32,32], index: 3, kind: input, shape index: {}]   ;;  %s3424_s4 = inlined_call_operand.vmem [shape: f32[2,32,32], index: 4, kind: input, shape index: {}]   ;;  %s3425_s5 = inlined_call_operand.vmem [shape: f32[2,32,64], index: 5, kind: input, shape index: {}]   ;;  %s3426_s6 = inlined_call_operand.vmem [shape: f32[2,64,32], index: 6, kind: input, shape index: {}]   ;;  %s3427_s7 = inlined_call_operand.vmem [shape: f32[2,1,64], index: 7, kind: input, shape index: {}]   ;;  %s3428_s8 = inlined_call_operand.vmem [shape: f32[2,9,32], index: 8, kind: input, shape index: {}]   ;;  %s3429_s9 = inlined_call_operand.vmem [shape: f32[2,8,32], index: 9, kind: output, shape index: {}]  }
   0x1   :  { %3430 = sst [smem:[#allocation4_spill]] %s3421_s1  ;;  %s3114_s11 = smov 0  }
   0x2   :  { %3431 = sst [smem:[#allocation5_spill]] %s3422_s2 }
   0x3   :  { %3432 = sst [smem:[#allocation6_spill]] %s3423_s3 }
   0x4 LB: > { %s28_s12 = sadd.s32 1, %s3045_s10  ;;  %p2663_p0 = scmp.ge.s32.totalorder %s3049_s11, 1  ;;  %s3049_s11 = sphi %s3114_s11, %s19_s11   ;;  %s3045_s10 = sphi %s3112_s10, %s3439_s10   ;;  %s3041_s30 = sphi %s3110_s30, %s3438_s30  }
   0x5   : > { %p29_p1 = scmp.ge.s32.totalorder %s28_s12, 2  ;;  %p378_p2 = scmp.lt.s32.totalorder %s3049_s11, 3 }
   0x7   : > { %s3441_s12 = smov (%p29_p1, %s28_s12), 0  ;;  %p379_p3 = pnand %p2663_p0, %p378_p2 }
   0x8   : > { %3433 = sst [smem:[#allocation3_spill]] %s3441_s12  ;;  %p458_p4 = scmp.lt.s32.totalorder (!%p379_p3), %s3041_s30, 1 }
   0x9   : > { %382 = sbr.rel (%p379_p3) target bundleno = 2417 (0x971), region = 56  ;;  %s3434_s1 = sld [smem:[#allocation4_spill]] (!%p379_p3) }
   0xa   : > { %s3435_s2 = sld [smem:[#allocation5_spill]] (!%p379_p3)  ;;  %p2678_p5 = scmp.ne.s32.totalorder (!%p379_p3), %s3041_s30, 0 }
   0xb   : > { %s3436_s3 = sld [smem:[#allocation6_spill]] (!%p379_p3) }
   0xe   : > { %s3128_s13 = scalar_select %p458_p4, %s3041_s30, 1 }
  0x10   : > { %s2721_s14 = sshll.u32 %s3128_s13, 5  ;;  %s2726_s15 = sshll.u32 %s3128_s13, 6 }
  0x11   : > { %s3135_s18 = scalar_lea.vmem %s3434_s1, %s2721_s14  ;;  %s3140_s21 = scalar_lea.vmem %s3435_s2, %s2721_s14 }
  0x12   : > { %s3145_s24 = scalar_lea.vmem %s3436_s3, %s2721_s14  ;;  %s3150_s27 = scalar_lea.vmem %s3424_s4, %s2721_s14 }
  0x13   : > { %s3155_s16 = scalar_lea.vmem %s3425_s5, %s2721_s14  ;;  %s3160_s19 = scalar_lea.vmem %s3426_s6, %s2726_s15 }
  0x14   : > { %s490_s22 = scalar_lea.vmem %s3427_s7, %s3128_s13  ;;  %s2727_s23 = sshll.u32 %s3128_s13, 4 }
  0x15   : > { %s3170_s25 = scalar_lea.vmem %s3428_s8, %s2727_s23  ;;  %505 = sbr.rel (%p2678_p5) target bundleno = 33 (0x21), region = 60 }
  0x1a   : > { %v506_v0 = vld [vmem:[%s3420_s0] sm:$0xff]  ;;  %vm508_vm0 = vcmask 261120   ;;  %v507_v1 = vld [vmem:[%s3420_s0 + $0x8] sm:$0xff]  ;;  %v511_v2 = vlaneseq  ;;  %vm517_vm1 = vcmask 64512   ;;  %v3051_v5 = vmov 0.0  }
  0x1b   : > { %509 = vst.msk [vmem:[%s3429_s9] sm:$0xff] %vm508_vm0, %v506_v0  ;;  %510 = vst.msk [vmem:[%s3429_s9 + $0x8] sm:$0xff] %vm508_vm0, %v507_v1 }
  0x1c   : > { %v512_v3 = vshrl.u32 %v511_v2, 7  ;;  %v514_v4 = vand.u32 127, %v511_v2 }
  0x1e   : > { %vm515_vm2 = vcmp.gt.s32.totalorder %v514_v4, %v512_v3 }
  0x1f   : > { %v516_v6 = vsel %vm515_vm2, -inf, %v3051_v5 }
  0x20   : > { %518 = vst.msk [vmem:[#allocation2] sm:$0xff] %vm517_vm1, %v516_v6 }
  0x21 PF: > { %v526_v7 = vld [vmem:[%s3135_s18 + $0x18] sm:$0xff]  ;;  %v525_v8 = vld [vmem:[%s3135_s18 + $0x10] sm:$0xff]  ;;  %vm531_vm3 = vcmask 261120   ;;  %v524_v10 = vld [vmem:[%s3135_s18 + $0x8] sm:$0xff]  ;;  %v3052_v17 = vmov 0.0   ;;  %vm3053_vm4 = vmmov 0   ;;  %v527_v18 = vlaneseq }
  0x22   : > { %2800 = vmatprep.subr.mxu1 %v526_v7  ;;  %v3189_v9 = vld [vmem:[%s3429_s9] sm:$0xff]  ;;  %v3200_v12 = vld [vmem:[%s3429_s9 + $0x8] sm:$0xff]  ;;  %v616_v13 = vld [vmem:[%s3140_s21 + $0x18] sm:$0xff]  ;;  %vm828_vm5 = vcmask 64512   ;;  %s3057_s23 = smov 8   ;;  %s3058_s26 = smov 16  }
  0x23   : > { %2801 = vmatpush3.msra.mxu1 %v526_v7  ;;  %2808 = vmatprep.mubr.msk.f32.mxu1 %vm531_vm3, %v3189_v9  ;;  %v523_v11 = vld [vmem:[%s3135_s18] sm:$0xff]  ;;  %v615_v14 = vld [vmem:[%s3140_s21 + $0x10] sm:$0xff]  ;;  %v614_v15 = vld [vmem:[%s3140_s21 + $0x8] sm:$0xff]  ;;  %v3215_v19 = vshrl.u32 %v527_v18, 7  ;;  %s3054_s18 = smov 120   ;;  %s3059_s14 = smov 24  }
  0x24   : > { %2802 = vmatprep.subr.mxu1 %v525_v8  ;;  %2830 = vmatprep.mubr.msk.f32.mxu0 %vm531_vm3, %v3189_v9  ;;  %v613_v16 = vld [vmem:[%s3140_s21] sm:$0xff]  ;;  %v699_v20 = vld [vmem:[%s3145_s24 + $0x18] sm:$0xff]  ;;  %v698_v21 = vld [vmem:[%s3145_s24 + $0x10] sm:$0xff]  ;;  %s3055_s21 = smov 112   ;;  %vm2135_vm14 = vcmask 130048   ;;  %vm2138_vm15 = vcmask 195584  }
  0x25   : > { %2803 = vmatpush3.msra.mxu1 %v525_v8  ;;  %2822 = vmatprep.subr.mxu0 %v699_v20  ;;  %v529_v22 = vsub.s32 0, %v3215_v19  ;;  %v697_v23 = vld [vmem:[%s3145_s24 + $0x8] sm:$0xff]  ;;  %v3222_v24 = vld [vmem:[%s3170_s25] sm:$0xff]  ;;  %v619_v29 = vsub.s32 1, %v3215_v19  ;;  %v702_v49 = vsub.s32 2, %v3215_v19  ;;  %vm2377_vm0 = vcmask 523264  }
  0x26   : > { %2804 = vmatprep.subr.mxu1 %v524_v10  ;;  %2823 = vmatpush3.msra.mxu0 %v699_v20  ;;  %v696_v25 = vld [vmem:[%s3145_s24] sm:$0xff]  ;;  %s3056_s24 = smov 104  }
  0x27   : > { %2805 = vmatpush3.msra.mxu1 %v524_v10  ;;  %2824 = vmatprep.subr.mxu0 %v698_v21  ;;  %v530_v26 = vrot.slane %v3222_v24, %v529_v22  ;;  %v620_v32 = vrot.slane %v3222_v24, %v619_v29  ;;  %v703_v50 = vrot.slane %v3222_v24, %v702_v49  ;;  %v827_v55 = vld [vmem:[#allocation2] sm:$0xff] }
  0x28   : > { %2806 = vmatprep.subr.mxu1 %v523_v11  ;;  %2825 = vmatpush3.msra.mxu0 %v698_v21 }
  0x29   : > { %2807 = vmatpush3.msra.mxu1 %v523_v11  ;;  %2826 = vmatprep.subr.mxu0 %v697_v23 }
  0x2a   : > { %2809 = vmatmul.mubr.msk.f32.vlgmr.msra.gmra.mxu1 %vm531_vm3, %v3200_v12  ;;  %2811 = vmatprep.subr.mxu1 %v616_v13 }
  0x2b   : > { %2812 = vmatpush3.msra.mxu1 %v616_v13  ;;  %2819 = vmatprep.mubr.msk.f32.mxu1 %vm531_vm3, %v3189_v9 }
  0x2c   : > { %2813 = vmatprep.subr.mxu1 %v615_v14  ;;  %2827 = vmatpush3.msra.mxu0 %v697_v23 }
  0x2d   : > { %2814 = vmatpush3.msra.mxu1 %v615_v14  ;;  %2828 = vmatprep.subr.mxu0 %v696_v25 }
  0x2e   : > { %2815 = vmatprep.subr.mxu1 %v614_v15  ;;  %2829 = vmatpush3.msra.mxu0 %v696_v25 }
  0x2f   : > { %2816 = vmatpush3.msra.mxu1 %v614_v15  ;;  %2831 = vmatmul.mubr.msk.f32.vlgmr.msra.gmra.mxu0 %vm531_vm3, %v3200_v12 }
  0x30   : > { %2817 = vmatprep.subr.mxu1 %v613_v16  ;;  %2843 = vmatprep.subr.mxu0 %v3052_v17 }
  0x31   : > { %2818 = vmatpush3.msra.mxu1 %v613_v16  ;;  %2845 = vmatprep.mubr.msk.f32.mxu0 %vm3053_vm4, %v3052_v17 }
  0x32   : > { %2820 = vmatmul.mubr.msk.f32.vlgmr.msra.gmra.mxu1 %vm531_vm3, %v3200_v12  ;;  %2833 = vmatprep.subr.mxu1 %v3052_v17 }
  0x33   : > { %2835 = vmatprep.mubr.msk.f32.mxu1 %vm3053_vm4, %v3052_v17 }
  0xea   : > { %v2810_v27 = vpop.f32.mrf.mxu1 }
  0xeb   : > { %v610_v28 = vadd.f32 %v2810_v27, %v530_v26 }
  0xec   : > { %v604_v30 = vpop.f32.mrf.mxu1 }
  0xed   : > { %v605_v31 = vadd.f32 %v604_v30, %v530_v26  ;;  %783 = vrot.lane.b32.xlu1 %v610_v28, %s3054_s18 }
  0xef   : > { %785 = vrot.lane.b32.xlu0 %v605_v31, %s3055_s21  ;;  %v2832_v51 = vpop.f32.mrf.mxu0 }
  0xf0   : > { %v3287_v52 = vadd.f32 %v2832_v51, %v703_v50 }
  0xf1   : > { %787 = vrot.lane.b32.xlu1 %v610_v28, %s3055_s21  ;;  %v770_v53 = vpop.f32.mrf.mxu0 }
  0xf2   : > { %v2821_v33 = vpop.f32.mrf.mxu1  ;;  %v3289_v54 = vadd.f32 %v770_v53, %v703_v50 }
  0xf3   : > { %v693_v34 = vadd.f32 %v2821_v33, %v620_v32 }
  0xf4   : > { %v687_v35 = vpop.f32.mrf.mxu1 }
  0xf5   : > { %v688_v36 = vadd.f32 %v687_v35, %v620_v32  ;;  %797 = vrot.lane.b32.xlu0 %v693_v34, %s3054_s18  ;;  %781 = vrot.lane.b32.xlu1 %v605_v31, %s3054_s18 }
  0xf7   : > { %2834 = vmatpush3.xpose.msk.msra.mxu1 %vm828_vm5, %v688_v36 }
  0xf8   : > { %2838 = vmatprep.subr.mxu1 %v3052_v17 }
  0xf9   : > { %795 = vrot.lane.b32.xlu0 %v688_v36, %s3054_s18  ;;  %801 = vrot.lane.b32.xlu1 %v693_v34, %s3055_s21 }
  0xfa   : > { %2836 = vmatmul.mubr.msk.f32.vlgmr.msra.gmra.mxu1 %vm828_vm5, %v605_v31 }
  0xfb   : > { %2839 = vmatpush3.xpose.msk.msra.mxu1 %vm828_vm5, %v693_v34  ;;  %2840 = vmatprep.mubr.msk.f32.mxu1 %vm3053_vm4, %v3052_v17 }
  0xfc   : > { %2848 = vmatprep.subr.mxu1 %v3052_v17 }
  0xfd   : > { %799 = vrot.lane.b32.xlu0 %v688_v36, %s3055_s21  ;;  %805 = vrot.lane.b32.xlu1 %v693_v34, %s3056_s24 }
  0xfe   : > { %2841 = vmatmul.mubr.msk.f32.vlgmr.msra.gmra.mxu1 %vm828_vm5, %v610_v28 }
  0xff   : > { %2850 = vmatprep.mubr.msk.f32.mxu1 %vm3053_vm4, %v3052_v17 }
 0x101   : > { %803 = vrot.lane.b32.xlu0 %v688_v36, %s3056_s24  ;;  %791 = vrot.lane.b32.xlu1 %v610_v28, %s3056_s24 }
 0x105   : > { %789 = vrot.lane.b32.xlu0 %v605_v31, %s3056_s24 }
 0x15f   : > { %v784_v37 = vpop.permute.xlu1 %783 }
 0x161   : > { %v786_v38 = vpop.permute.xlu0 %785 }
 0x163   : > { %v788_v39 = vpop.permute.xlu1 %787 }
 0x167   : > { %v798_v40 = vpop.permute.xlu0 %797  ;;  %v782_v41 = vpop.permute.xlu1 %781 }
 0x168   : > { %2849 = vmatpush3.xpose.msk.msra.mxu1 %vm828_vm5, %v798_v40 }
 0x169   : > { %2858 = vmatprep.subr.mxu1 %v3052_v17 }
 0x16b   : > { %v796_v42 = vpop.permute.xlu0 %795  ;;  %v802_v43 = vpop.permute.xlu1 %801  ;;  %2851 = vmatmul.mubr.msk.f32.vlgmr.msra.gmra.mxu1 %vm828_vm5, %v784_v37 }
 0x16c   : > { %2844 = vmatpush3.xpose.msk.msra.mxu0 %vm828_vm5, %v796_v42  ;;  %2859 = vmatpush3.xpose.msk.msra.mxu1 %vm828_vm5, %v802_v43 }
 0x16d   : > { %2860 = vmatprep.mubr.msk.f32.mxu1 %vm3053_vm4, %v3052_v17  ;;  %2853 = vmatprep.subr.mxu0 %v3052_v17 }
 0x16e   : > { %2868 = vmatprep.subr.mxu1 %v3052_v17 }
 0x16f   : > { %v800_v44 = vpop.permute.xlu0 %799  ;;  %2846 = vmatmul.mubr.msk.f32.vlgmr.msra.gmra.mxu0 %vm828_vm5, %v782_v41  ;;  %v806_v45 = vpop.permute.xlu1 %805  ;;  %2861 = vmatmul.mubr.msk.f32.vlgmr.msra.gmra.mxu1 %vm828_vm5, %v788_v39 }
 0x170   : > { %2854 = vmatpush3.xpose.msk.msra.mxu0 %vm828_vm5, %v800_v44  ;;  %2869 = vmatpush3.xpose.msk.msra.mxu1 %vm828_vm5, %v806_v45 }
 0x171   : > { %2855 = vmatprep.mubr.msk.f32.mxu0 %vm3053_vm4, %v3052_v17  ;;  %2863 = vmatprep.subr.mxu0 %v3052_v17 }
 0x172   : > { %2870 = vmatprep.mubr.msk.f32.mxu1 %vm3053_vm4, %v3052_v17  ;;  %2878 = vmatprep.subr.mxu1 %v3052_v17 }
 0x173   : > { %v804_v46 = vpop.permute.xlu0 %803  ;;  %2856 = vmatmul.mubr.msk.f32.vlgmr.msra.gmra.mxu0 %vm828_vm5, %v786_v38  ;;  %v792_v47 = vpop.permute.xlu1 %791 }
 0x174   : > { %2864 = vmatpush3.xpose.msk.msra.mxu0 %vm828_vm5, %v804_v46  ;;  %2871 = vmatmul.mubr.msk.f32.vlgmr.msra.gmra.mxu1 %vm828_vm5, %v792_v47 }
 0x175   : > { %2865 = vmatprep.mubr.msk.f32.mxu0 %vm3053_vm4, %v3052_v17  ;;  %2873 = vmatprep.subr.mxu0 %v3052_v17 }
 0x176   : > { %2880 = vmatprep.mubr.msk.f32.mxu1 %vm3053_vm4, %v3052_v17  ;;  %2879 = vmatpush3.msra.mxu1 %v3287_v52 }
 0x177   : > { %v790_v48 = vpop.permute.xlu0 %789  ;;  %2888 = vmatprep.subr.mxu1 %v3052_v17 }
 0x178   : > { %2866 = vmatmul.mubr.msk.f32.vlgmr.msra.gmra.mxu0 %vm828_vm5, %v790_v48 }
 0x179   : > { %2875 = vmatprep.mubr.msk.f32.mxu0 %vm3053_vm4, %v3052_v17  ;;  %2874 = vmatpush3.msra.mxu0 %v3289_v54 }
 0x17a   : > { %2883 = vmatprep.subr.mxu0 %v3052_v17 }
 0x1ba   : > { %v899_v56 = vpop.f32.mrf.mxu1 }
 0x1bb   : > { %v900_v57 = vadd.f32 %v899_v56, %v827_v55 }
 0x1bc   : > { %v2837_v58 = vpop.f32.mrf.mxu1 }
 0x1bd   : > { %vm1421_vm6 = vcmp.eq.f32.partialorder %v900_v57, 0.0 }
 0x1be   : > { %v973_v59 = vpop.f32.mrf.mxu1  ;;  %v1429_v60 = vsel %vm1421_vm6, -inf, %v900_v57 }
 0x1bf   : > { %v974_v61 = vadd.f32 %v973_v59, %v827_v55  ;;  %v1437_v62 = vsel %vm828_vm5, %v1429_v60, -inf }
 0x1c0   : > { %1438 = vmax.xlane.f32.xlu0 %v1437_v62  ;;  %v2842_v63 = vpop.f32.mrf.mxu1 }
 0x1c1   : > { %vm1422_vm7 = vcmp.eq.f32.partialorder %v974_v61, 0.0 }
 0x1c2   : > { %v1430_v0 = vsel %vm1422_vm7, -inf, %v974_v61 }
 0x1c3   : > { %v1440_v1 = vsel %vm828_vm5, %v1430_v0, -inf }
 0x1c4   : > { %1441 = vmax.xlane.f32.xlu1 %v1440_v1 }
 0x22b   : > { %v1121_v2 = vpop.f32.mrf.mxu1 }
 0x22c   : > { %v1122_v4 = vadd.f32 %v1121_v2, %v827_v55 }
 0x22d   : > { %v2852_v3 = vpop.f32.mrf.mxu1 }
 0x22e   : > { %vm1424_vm9 = vcmp.eq.f32.partialorder %v1122_v4, 0.0 }
 0x22f   : > { %v1047_v5 = vpop.f32.mrf.mxu0  ;;  %v1269_v6 = vpop.f32.mrf.mxu1  ;;  %v1432_v21 = vsel %vm1424_vm9, -inf, %v1122_v4 }
 0x230   : > { %v1048_v7 = vadd.f32 %v1047_v5, %v827_v55  ;;  %v1270_v11 = vadd.f32 %v1269_v6, %v827_v55  ;;  %v1446_v28 = vsel %vm828_vm5, %v1432_v21, -inf }
 0x231   : > { %v2847_v8 = vpop.f32.mrf.mxu0  ;;  %v2862_v10 = vpop.f32.mrf.mxu1 }
 0x232   : > { %vm1423_vm8 = vcmp.eq.f32.partialorder %v1048_v7, 0.0  ;;  %vm1426_vm11 = vcmp.eq.f32.partialorder %v1270_v11, 0.0 }
 0x233   : > { %v1195_v13 = vpop.f32.mrf.mxu0  ;;  %v1431_v14 = vsel %vm1423_vm8, -inf, %v1048_v7  ;;  %v1434_v30 = vsel %vm1426_vm11, -inf, %v1270_v11 }
 0x234   : > { %v1196_v15 = vadd.f32 %v1195_v13, %v827_v55  ;;  %v1417_v16 = vpop.f32.mrf.mxu1  ;;  %v1443_v18 = vsel %vm828_vm5, %v1431_v14, -inf  ;;  %v1452_v32 = vsel %vm828_vm5, %v1434_v30, -inf }
 0x235   : > { %v2857_v20 = vpop.f32.mrf.mxu0  ;;  %1444 = vmax.xlane.f32.xlu0 %v1443_v18  ;;  %v1418_v22 = vadd.f32 %v1417_v16, %v827_v55 }
 0x236   : > { %v2872_v23 = vpop.f32.mrf.mxu1  ;;  %vm1425_vm10 = vcmp.eq.f32.partialorder %v1196_v15, 0.0 }
 0x237   : > { %v1433_v25 = vsel %vm1425_vm10, -inf, %v1196_v15  ;;  %vm1428_vm12 = vcmp.eq.f32.partialorder %v1418_v22, 0.0 }
 0x238   : > { %v1343_v26 = vpop.f32.mrf.mxu0  ;;  %v1449_v27 = vsel %vm828_vm5, %v1433_v25, -inf  ;;  %v1436_v35 = vsel %vm1428_vm12, -inf, %v1418_v22 }
 0x239   : > { %v1344_v29 = vadd.f32 %v1343_v26, %v827_v55  ;;  %1450 = vmax.xlane.f32.xlu1 %v1449_v27  ;;  %1447 = vmax.xlane.f32.xlu0 %v1446_v28  ;;  %v1458_v36 = vsel %vm828_vm5, %v1436_v35, -inf }
 0x23a   : > { %v2867_v31 = vpop.f32.mrf.mxu0 }
 0x23b   : > { %vm1427_vm13 = vcmp.eq.f32.partialorder %v1344_v29, 0.0 }
 0x23c   : > { %v1435_v33 = vsel %vm1427_vm13, -inf, %v1344_v29 }
 0x23d   : > { %1453 = vmax.xlane.f32.xlu0 %v1452_v32  ;;  %v1455_v34 = vsel %vm828_vm5, %v1435_v33, -inf }
 0x23e   : > { %1456 = vmax.xlane.f32.xlu1 %v1455_v34 }
 0x241   : > { %1459 = vmax.xlane.f32.xlu0 %v1458_v36 }
 0x249   : > { %v1439_v39 = vpop.xlane.xlu0 %1438 }
 0x24a   : > { %v1461_v41 = vsub.f32 %v1429_v60, %v1439_v39 }
 0x24c   : > { %v1469_v42 = vmul.f32 1.442695, %v1461_v41 }
 0x24d   : > { %v1442_v37 = vpop.xlane.xlu1 %1441 }
 0x24e   : > { %v1462_v38 = vsub.f32 %v1430_v0, %v1442_v37 }
 0x24f   : > { %809 = vrot.lane.b32.xlu1 %v3289_v54, %s3054_s18 }
 0x250   : > { %v1471_v40 = vmul.f32 1.442695, %v1462_v38 }
 0x252   : > { %2987 = vpow2.f32 %v1471_v40 }
 0x253   : > { %815 = vrot.lane.b32.xlu1 %v3289_v54, %s3055_s21  ;;  %2989 = vpow2.f32 %v1469_v42 }
 0x257   : > { %817 = vrot.lane.b32.xlu1 %v3287_v52, %s3055_s21  ;;  %811 = vrot.lane.b32.xlu0 %v3287_v52, %s3054_s18 }
 0x25f   : > { %v2988_v43 = vpop.eup %2987 }
 0x260   : > { %v1488_v44 = vsel %vm828_vm5, %v2988_v43, 0.0  ;;  %v2990_v45 = vpop.eup %2989 }
 0x261   : > { %v1485_v46 = vsel %vm828_vm5, %v2990_v45, 0.0 }
 0x276   : > { %1489 = vadd.xlane.f32.xlu0 %v1488_v44 }
 0x27b   : > { %1486 = vadd.xlane.f32.xlu1 %v1485_v46 }
 0x2be   : > { %v1445_v47 = vpop.xlane.xlu0 %1444 }
 0x2bf   : > { %v1463_v48 = vsub.f32 %v1431_v14, %v1445_v47 }
 0x2c1   : > { %v1473_v49 = vmul.f32 1.442695, %v1463_v48 }
 0x2c2   : > { %v1451_v50 = vpop.xlane.xlu1 %1450  ;;  %v1448_v51 = vpop.xlane.xlu0 %1447 }
 0x2c3   : > { %2991 = vpow2.f32 %v1473_v49  ;;  %v1465_v53 = vsub.f32 %v1433_v25, %v1451_v50  ;;  %v1464_v55 = vsub.f32 %v1432_v21, %v1448_v51 }
 0x2c5   : > { %v1477_v56 = vmul.f32 1.442695, %v1465_v53  ;;  %v1475_v57 = vmul.f32 1.442695, %v1464_v55  ;;  %v2144_v53 = vld [vmem:[%s3150_s27 + $0x18] sm:$0xff]  ;;  %v2143_v55 = vld [vmem:[%s3150_s27 + $0x10] sm:$0xff] }
 0x2c6   : > { %v1454_v58 = vpop.xlane.xlu0 %1453 }
 0x2c7   : > { %2993 = vpow2.f32 %v1477_v56  ;;  %v1466_v59 = vsub.f32 %v1434_v30, %v1454_v58  ;;  %v1457_v60 = vpop.xlane.xlu1 %1456  ;;  %v2142_v56 = vld [vmem:[%s3150_s27 + $0x8] sm:$0xff] }
 0x2c8   : > { %2995 = vpow2.f32 %v1475_v57  ;;  %v1467_v61 = vsub.f32 %v1435_v33, %v1457_v60  ;;  %v2141_v57 = vld [vmem:[%s3150_s27] sm:$0xff] }
 0x2c9   : > { %v1479_v62 = vmul.f32 1.442695, %v1466_v59 }
 0x2ca   : > { %v1481_v63 = vmul.f32 1.442695, %v1467_v61  ;;  %v1460_v0 = vpop.xlane.xlu0 %1459 }
 0x2cb   : > { %2997 = vpow2.f32 %v1479_v62  ;;  %v1468_v1 = vsub.f32 %v1436_v35, %v1460_v0  ;;  %v810_v18 = vpop.permute.xlu1 %809 }
 0x2cc   : > { %2999 = vpow2.f32 %v1481_v63 }
 0x2cd   : > { %v1483_v2 = vmul.f32 1.442695, %v1468_v1 }
 0x2ce   : > { %v812_v21 = vpop.permute.xlu0 %811 }
 0x2cf   : > { %3001 = vpow2.f32 %v1483_v2  ;;  %v816_v20 = vpop.permute.xlu1 %815 }
 0x2d0   : > { %v2992_v3 = vpop.eup %2991 }
 0x2d1   : > { %v1491_v4 = vsel %vm828_vm5, %v2992_v3, 0.0 }
 0x2d2   : > { %1492 = vadd.xlane.f32.xlu1 %v1491_v4 }
 0x2d3   : > { %v818_v23 = vpop.permute.xlu1 %817 }
 0x2d4   : > { %v2994_v5 = vpop.eup %2993 }
 0x2d5   : > { %v2996_v6 = vpop.eup %2995  ;;  %v1497_v7 = vsel %vm828_vm5, %v2994_v5, 0.0 }
 0x2d6   : > { %1498 = vadd.xlane.f32.xlu1 %v1497_v7  ;;  %v1494_v8 = vsel %vm828_vm5, %v2996_v6, 0.0 }
 0x2d7   : > { %1495 = vadd.xlane.f32.xlu0 %v1494_v8 }
 0x2d8   : > { %v2998_v10 = vpop.eup %2997 }
 0x2d9   : > { %v3316_v11 = vpop.eup %2999  ;;  %v1500_v13 = vsel %vm828_vm5, %v2998_v10, 0.0 }
 0x2da   : > { %v1503_v14 = vsel %vm828_vm5, %v3316_v11, 0.0 }
 0x2db   : > { %1501 = vadd.xlane.f32.xlu0 %v1500_v13  ;;  %1504 = vadd.xlane.f32.xlu1 %v1503_v14 }
 0x2dc   : > { %v3321_v15 = vpop.eup %3001 }
 0x2dd   : > { %v1506_v16 = vsel %vm828_vm5, %v3321_v15, 0.0 }
 0x2df   : > { %1507 = vadd.xlane.f32.xlu0 %v1506_v16 }
 0x2ec   : > { %823 = vrot.lane.b32.xlu1 %v3287_v52, %s3056_s24 }
 0x2f5   : > { %821 = vrot.lane.b32.xlu0 %v3289_v54, %s3056_s24 }
 0x2ff   : > { %v1490_v22 = vpop.xlane.xlu0 %1489 }
 0x300   : > { %3003 = vrcp.f32 %v1490_v22 }
 0x304   : > { %v1487_v25 = vpop.xlane.xlu1 %1486 }
 0x305   : > { %3005 = vrcp.f32 %v1487_v25 }
 0x30d   : > { %v3004_v26 = vpop.eup %3003 }
 0x30e   : > { %v1512_v27 = vmul.f32 %v3004_v26, %v2988_v43 }
 0x310   : > { %2881 = vmatmul.mubr.msk.f32.vlgmr.msra.gmra.mxu1 %vm828_vm5, %v1512_v27 }
 0x311   : > { %2889 = vmatpush3.msra.mxu1 %v812_v21  ;;  %2890 = vmatprep.mubr.msk.f32.mxu1 %vm3053_vm4, %v3052_v17  ;;  %v2147_v21 = vsub.s32 3, %v3215_v19 }
 0x312   : > { %v3006_v52 = vpop.eup %3005  ;;  %2898 = vmatprep.subr.mxu1 %v3052_v17 }
 0x313   : > { %v1510_v28 = vmul.f32 %v3006_v52, %v2990_v45  ;;  %v2148_v22 = vrot.slane %v3222_v24, %v2147_v21 }
 0x315   : > { %2876 = vmatmul.mubr.msk.f32.vlgmr.msra.gmra.mxu0 %vm828_vm5, %v1510_v28 }
 0x316   : > { %2884 = vmatpush3.msra.mxu0 %v810_v18  ;;  %2885 = vmatprep.mubr.msk.f32.mxu0 %vm3053_vm4, %v3052_v17 }
 0x317   : > { %2893 = vmatprep.subr.mxu0 %v3052_v17 }
 0x35b   : > { %v1493_v54 = vpop.xlane.xlu1 %1492 }
 0x35c   : > { %3007 = vrcp.f32 %v1493_v54 }
 0x35f   : > { %v1499_v29 = vpop.xlane.xlu1 %1498 }
 0x360   : > { %3009 = vrcp.f32 %v1499_v29  ;;  %v1496_v30 = vpop.xlane.xlu0 %1495 }
 0x361   : > { %3011 = vrcp.f32 %v1496_v30 }
 0x364   : > { %v1502_v31 = vpop.xlane.xlu0 %1501  ;;  %v1505_v32 = vpop.xlane.xlu1 %1504 }
 0x365   : > { %3013 = vrcp.f32 %v1502_v31 }
 0x366   : > { %3015 = vrcp.f32 %v1505_v32 }
 0x368   : > { %v1508_v33 = vpop.xlane.xlu0 %1507  ;;  %v824_v45 = vpop.permute.xlu1 %823 }
 0x369   : > { %v3008_v34 = vpop.eup %3007  ;;  %3017 = vrcp.f32 %v1508_v33 }
 0x36a   : > { %v1514_v35 = vmul.f32 %v3008_v34, %v2992_v3 }
 0x36c   : > { %2886 = vmatmul.mubr.msk.f32.vlgmr.msra.gmra.mxu0 %vm828_vm5, %v1514_v35  ;;  %v822_v40 = vpop.permute.xlu0 %821 }
 0x36d   : > { %v3010_v36 = vpop.eup %3009  ;;  %2894 = vmatpush3.msra.mxu0 %v816_v20  ;;  %2895 = vmatprep.mubr.msk.f32.mxu0 %vm3053_vm4, %v3052_v17 }
 0x36e   : > { %v3012_v37 = vpop.eup %3011  ;;  %2903 = vmatprep.subr.mxu0 %v3052_v17  ;;  %v1518_v38 = vmul.f32 %v3010_v36, %v2994_v5 }
 0x36f   : > { %v1516_v39 = vmul.f32 %v3012_v37, %v2996_v6 }
 0x370   : > { %2896 = vmatmul.mubr.msk.f32.vlgmr.msra.gmra.mxu0 %vm828_vm5, %v1518_v38  ;;  %v2274_v38 = vld [vmem:[%s3155_s16 + $0x18] sm:$0xff] }
 0x371   : > { %2891 = vmatmul.mubr.msk.f32.vlgmr.msra.gmra.mxu1 %vm828_vm5, %v1516_v39  ;;  %2904 = vmatpush3.msra.mxu0 %v822_v40  ;;  %v2273_v39 = vld [vmem:[%s3155_s16 + $0x10] sm:$0xff]  ;;  %v2272_v40 = vld [vmem:[%s3155_s16 + $0x8] sm:$0xff] }
 0x372   : > { %v3014_v41 = vpop.eup %3013  ;;  %2899 = vmatpush3.msra.mxu1 %v818_v23  ;;  %2900 = vmatprep.mubr.msk.f32.mxu1 %vm3053_vm4, %v3052_v17 }
 0x373   : > { %v3016_v42 = vpop.eup %3015  ;;  %2908 = vmatprep.subr.mxu1 %v3052_v17  ;;  %v1520_v43 = vmul.f32 %v3014_v41, %v2998_v10  ;;  %2905 = vmatprep.mubr.msk.f32.mxu0 %vm3053_vm4, %v3052_v17  ;;  %v2271_v41 = vld [vmem:[%s3155_s16] sm:$0xff] }
 0x374   : > { %v1522_v44 = vmul.f32 %v3016_v42, %v3316_v11  ;;  %2913 = vmatprep.subr.mxu0 %v2144_v53  ;;  %v2372_v42 = vld [vmem:[%s3160_s19 + $0x38] sm:$0xff] }
 0x375   : > { %2901 = vmatmul.mubr.msk.f32.vlgmr.msra.gmra.mxu1 %vm828_vm5, %v1520_v43  ;;  %v2371_v43 = vld [vmem:[%s3160_s19 + $0x30] sm:$0xff] }
 0x376   : > { %v3018_v46 = vpop.eup %3017  ;;  %2909 = vmatpush3.msra.mxu1 %v824_v45  ;;  %2906 = vmatmul.mubr.msk.f32.vlgmr.msra.gmra.mxu0 %vm828_vm5, %v1522_v44  ;;  %v2370_v44 = vld [vmem:[%s3160_s19 + $0x28] sm:$0xff]  ;;  %v2369_v45 = vld [vmem:[%s3160_s19 + $0x20] sm:$0xff] }
 0x377   : > { %2910 = vmatprep.mubr.msk.f32.mxu1 %vm3053_vm4, %v3052_v17  ;;  %v1524_v47 = vmul.f32 %v3018_v46, %v3321_v15  ;;  %2914 = vmatpush3.msra.mxu0 %v2144_v53  ;;  %v2261_v53 = vsub.s32 4, %v3215_v19 }
 0x378   : > { %2915 = vmatprep.subr.mxu0 %v2143_v55  ;;  %2924 = vmatprep.subr.mxu1 %v2274_v38 }
 0x379   : > { %2911 = vmatmul.mubr.msk.f32.vlgmr.msra.gmra.mxu1 %vm828_vm5, %v1524_v47  ;;  %2916 = vmatpush3.msra.mxu0 %v2143_v55  ;;  %v2267_v55 = vsub.s32 5, %v3215_v19 }
 0x37a   : > { %2917 = vmatprep.subr.mxu0 %v2142_v56  ;;  %2925 = vmatpush3.msra.mxu1 %v2274_v38  ;;  %v2489_v38 = vsub.s32 6, %v3215_v19 }
 0x37b   : > { %2918 = vmatpush3.msra.mxu0 %v2142_v56  ;;  %2926 = vmatprep.subr.mxu1 %v2273_v39  ;;  %v2262_v56 = vrot.slane %v3222_v24, %v2261_v53 }
 0x37c   : > { %2919 = vmatprep.subr.mxu0 %v2141_v57  ;;  %2927 = vmatpush3.msra.mxu1 %v2273_v39  ;;  %v2495_v39 = vsub.s32 7, %v3215_v19 }
 0x37d   : > { %2920 = vmatpush3.msra.mxu0 %v2141_v57  ;;  %2928 = vmatprep.subr.mxu1 %v2272_v40 }
 0x37e   : > { %2929 = vmatpush3.msra.mxu1 %v2272_v40  ;;  %2935 = vmatprep.subr.mxu0 %v2372_v42  ;;  %v2490_v40 = vrot.slane %v3222_v24, %v2489_v38 }
 0x37f   : > { %2930 = vmatprep.subr.mxu1 %v2271_v41 }
 0x380   : > { %2931 = vmatpush3.msra.mxu1 %v2271_v41 }
 0x3d0   : > { %v1667_v48 = vpop.f32.mrf.mxu1 }
 0x3d2   : > { %v2882_v49 = vpop.f32.mrf.mxu1 }
 0x3d5   : > { %v1594_v50 = vpop.f32.mrf.mxu0 }
 0x3d7   : > { %v2877_v51 = vpop.f32.mrf.mxu0 }
 0x42c   : > { %v1740_v58 = vpop.f32.mrf.mxu0 }
 0x42d   : > { %2111 = vrot.lane.b32.xlu0 %v1740_v58, %s3057_s23 }
 0x42e   : > { %v2887_v17 = vpop.f32.mrf.mxu0 }
 0x42f   : > { %v2268_v17 = vrot.slane %v3222_v24, %v2267_v55 }
 0x430   : > { %v1886_v59 = vpop.f32.mrf.mxu0 }
 0x431   : > { %v1813_v60 = vpop.f32.mrf.mxu1  ;;  %2119 = vrot.lane.b32.xlu0 %v1886_v59, %s3058_s26 }
 0x432   : > { %2113 = vrot.lane.b32.xlu1 %v1813_v60, %s3057_s23  ;;  %v2897_v61 = vpop.f32.mrf.mxu0 }
 0x433   : > { %v2892_v62 = vpop.f32.mrf.mxu1 }
 0x435   : > { %v1959_v63 = vpop.f32.mrf.mxu1 }
 0x436   : > { %v2032_v0 = vpop.f32.mrf.mxu0  ;;  %2121 = vrot.lane.b32.xlu1 %v1959_v63, %s3058_s26 }
 0x437   : > { %2127 = vrot.lane.b32.xlu0 %v2032_v0, %s3059_s14  ;;  %v2902_v1 = vpop.f32.mrf.mxu1 }
 0x438   : > { %v2907_v2 = vpop.f32.mrf.mxu0  ;;  %v2368_v1 = vld [vmem:[%s3160_s19 + $0x18] sm:$0xff] }
 0x439   : > { %v2105_v3 = vpop.f32.mrf.mxu1  ;;  %v2367_v2 = vld [vmem:[%s3160_s19 + $0x10] sm:$0xff] }
 0x43a   : > { %2129 = vrot.lane.b32.xlu1 %v2105_v3, %s3059_s14  ;;  %v2366_v3 = vld [vmem:[%s3160_s19 + $0x8] sm:$0xff] }
 0x43b   : > { %v2912_v4 = vpop.f32.mrf.mxu1 }
 0x43c   : > { %v2365_v4 = vld [vmem:[%s3160_s19] sm:$0xff] }
 0x49f   : > { %v2112_v5 = vpop.permute.xlu0 %2111 }
 0x4a0   : > { %v2133_v8 = vsel %vm828_vm5, %v1594_v50, %v2112_v5  ;;  %v2711_v5 = vld [vmem:[%s490_s22] ss:$0 sm:$0xff] }
 0x4a3   : > { %v2120_v6 = vpop.permute.xlu0 %2119 }
 0x4a4   : > { %v2114_v7 = vpop.permute.xlu1 %2113  ;;  %v2136_v11 = vsel %vm2135_vm14, %v2133_v8, %v2120_v6 }
 0x4a5   : > { %v2134_v15 = vsel %vm828_vm5, %v1667_v48, %v2114_v7 }
 0x4a8   : > { %v2122_v10 = vpop.permute.xlu1 %2121 }
 0x4a9   : > { %v2128_v13 = vpop.permute.xlu0 %2127  ;;  %v2137_v16 = vsel %vm2135_vm14, %v2134_v15, %v2122_v10 }
 0x4aa   : > { %v2139_v14 = vsel %vm2138_vm15, %v2136_v11, %v2128_v13 }
 0x4ab   : > { %2921 = vmatprep.mubr.msk.f32.mxu0 %vm531_vm3, %v2139_v14  ;;  %v2714_v14 = vld [vmem:[%s3170_s25 + $0x8] ss:$0 sm:$0xff] }
 0x4ac   : > { %v2130_v18 = vpop.permute.xlu1 %2129 }
 0x4ad   : > { %v2140_v20 = vsel %vm2138_vm15, %v2137_v16, %v2130_v18 }
 0x4ae   : > { %2922 = vmatmul.mubr.msk.f32.vlgmr.msra.gmra.mxu0 %vm531_vm3, %v2140_v20 }
 0x4af   : > { %2936 = vmatpush3.msra.mxu0 %v2372_v42  ;;  %v2496_v42 = vrot.slane %v3222_v24, %v2495_v39 }
 0x4b0   : > { %2937 = vmatprep.subr.mxu0 %v2371_v43 }
 0x4b1   : > { %2938 = vmatpush3.msra.mxu0 %v2371_v43 }
 0x4b2   : > { %2939 = vmatprep.subr.mxu0 %v2370_v44 }
 0x4b3   : > { %2940 = vmatpush3.msra.mxu0 %v2370_v44 }
 0x4b4   : > { %2941 = vmatprep.subr.mxu0 %v2369_v45 }
 0x4b5   : > { %2942 = vmatpush3.msra.mxu0 %v2369_v45 }
 0x4b6   : > { %2943 = vmatprep.subr.mxu0 %v2368_v1 }
 0x4b7   : > { %2944 = vmatpush3.msra.mxu0 %v2368_v1 }
 0x4b8   : > { %2945 = vmatprep.subr.mxu0 %v2367_v2 }
 0x4b9   : > { %2946 = vmatpush3.msra.mxu0 %v2367_v2 }
 0x4ba   : > { %2947 = vmatprep.subr.mxu0 %v2366_v3 }
 0x4bb   : > { %2948 = vmatpush3.msra.mxu0 %v2366_v3 }
 0x4bc   : > { %2949 = vmatprep.subr.mxu0 %v2365_v4 }
 0x4bd   : > { %2950 = vmatpush3.msra.mxu0 %v2365_v4 }
 0x56e   : > { %v2923_v23 = vpop.f32.mrf.mxu0 }
 0x56f   : > { %v2227_v25 = vadd.f32 %v2923_v23, %v2148_v22 }
 0x570   : > { %v2221_v26 = vpop.f32.mrf.mxu0 }
 0x571   : > { %v2222_v27 = vadd.f32 %v2221_v26, %v2148_v22  ;;  %v2231_v52 = vadd.f32 %v2227_v25, %v3200_v12 }
 0x573   : > { %v2235_v28 = vsel %vm531_vm3, %v2231_v52, 0.0  ;;  %v2230_v54 = vadd.f32 %v2222_v27, %v3189_v9 }
 0x574   : > { %2236 = vadd.xlane.f32.xlu1 %v2235_v28 }
 0x575   : > { %v2232_v29 = vsel %vm531_vm3, %v2230_v54, 0.0 }
 0x576   : > { %2233 = vadd.xlane.f32.xlu0 %v2232_v29 }
 0x5fd   : > { %v2237_v30 = vpop.xlane.xlu1 %2236 }
 0x5fe   : > { %v2240_v31 = vmul.f32 0.03125, %v2237_v30 }
 0x5ff   : > { %v2234_v32 = vpop.xlane.xlu0 %2233 }
 0x600   : > { %v2239_v33 = vmul.f32 0.03125, %v2234_v32  ;;  %v2242_v34 = vsub.f32 %v2231_v52, %v2240_v31 }
 0x602   : > { %v2241_v35 = vsub.f32 %v2230_v54, %v2239_v33  ;;  %v2244_v37 = vmul.f32 %v2242_v34, %v2242_v34 }
 0x604   : > { %v2243_v36 = vmul.f32 %v2241_v35, %v2241_v35  ;;  %v2248_v9 = vsel %vm531_vm3, %v2244_v37, 0.0 }
 0x606   : > { %v2245_v12 = vsel %vm531_vm3, %v2243_v36, 0.0 }
 0x607   : > { %2246 = vadd.xlane.f32.xlu0 %v2245_v12 }
 0x60b   : > { %2249 = vadd.xlane.f32.xlu0 %v2248_v9 }
 0x690   : > { %v2247_v46 = vpop.xlane.xlu0 %2246 }
 0x691   : > { %v2251_v47 = vmul.f32 0.03125, %v2247_v46 }
 0x693   : > { %v2253_v48 = vadd.f32 1e-05, %v2251_v47 }
 0x694   : > { %v2250_v49 = vpop.xlane.xlu0 %2249 }
 0x695   : > { %3019 = vrsqrt.f32 %v2253_v48  ;;  %v2252_v50 = vmul.f32 0.03125, %v2250_v49 }
 0x697   : > { %v2254_v51 = vadd.f32 1e-05, %v2252_v50 }
 0x699   : > { %3021 = vrsqrt.f32 %v2254_v51 }
 0x6a2   : > { %v3020_v57 = vpop.eup %3019 }
 0x6a3   : > { %v2257_v58 = vmul.f32 %v3020_v57, %v2241_v35 }
 0x6a5   : > { %v2263_v59 = vmul.f32 %v2262_v56, %v2257_v58 }
 0x6a6   : > { %v3022_v60 = vpop.eup %3021 }
 0x6a7   : > { %v2258_v61 = vmul.f32 %v3022_v60, %v2242_v34  ;;  %v2269_v62 = vadd.f32 %v2268_v17, %v2263_v59 }
 0x6a9   : > { %v2264_v63 = vmul.f32 %v2262_v56, %v2258_v61  ;;  %2932 = vmatprep.mubr.msk.f32.mxu1 %vm531_vm3, %v2269_v62 }
 0x6ab   : > { %v2270_v0 = vadd.f32 %v2268_v17, %v2264_v63 }
 0x6ad   : > { %2933 = vmatmul.mubr.msk.f32.vlgmr.msra.gmra.mxu1 %vm531_vm3, %v2270_v0 }
 0x76d   : > { %v2934_v6 = vpop.f32.mrf.mxu1 }
 0x76e   : > { %v2360_v7 = vadd.f32 %v2934_v6, %v2711_v5 }
 0x76f   : > { %v2354_v8 = vpop.f32.mrf.mxu1 }
 0x770   : > { %v2355_v10 = vadd.f32 %v2711_v5, %v2354_v8  ;;  %v2364_v13 = vmax.f32 %v2360_v7, 0.0 }
 0x772   : > { %v2363_v11 = vmax.f32 %v2355_v10, 0.0 }
 0x774   : > { %2951 = vmatprep.mubr.msk.f32.mxu0 %vm2377_vm0, %v2363_v11 }
 0x775   : > { %2952 = vmatmul.mubr.msk.f32.vlgmr.msra.gmra.mxu0 %vm2377_vm0, %v2364_v13 }
 0x835   : > { %v2953_v15 = vpop.f32.mrf.mxu0 }
 0x836   : > { %v2456_v16 = vadd.f32 %v2953_v15, %v2714_v14 }
 0x837   : > { %v2450_v18 = vpop.f32.mrf.mxu0 }
 0x838   : > { %v2451_v20 = vadd.f32 %v2714_v14, %v2450_v18  ;;  %v2460_v21 = vadd.f32 %v2456_v16, %v2270_v0 }
 0x83a   : > { %v2464_v22 = vsel %vm531_vm3, %v2460_v21, 0.0  ;;  %v2459_v23 = vadd.f32 %v2451_v20, %v2269_v62 }
 0x83b   : > { %2465 = vadd.xlane.f32.xlu0 %v2464_v22 }
 0x83c   : > { %v2461_v25 = vsel %vm531_vm3, %v2459_v23, 0.0 }
 0x83d   : > { %2462 = vadd.xlane.f32.xlu1 %v2461_v25 }
 0x8c4   : > { %v2466_v26 = vpop.xlane.xlu0 %2465 }
 0x8c5   : > { %v2468_v27 = vmul.f32 0.03125, %v2466_v26 }
 0x8c6   : > { %v2463_v52 = vpop.xlane.xlu1 %2462 }
 0x8c7   : > { %v2470_v28 = vsub.f32 %v2460_v21, %v2468_v27  ;;  %v2467_v54 = vmul.f32 0.03125, %v2463_v52 }
 0x8c9   : > { %v2469_v29 = vsub.f32 %v2459_v23, %v2467_v54  ;;  %v2472_v30 = vmul.f32 %v2470_v28, %v2470_v28 }
 0x8cb   : > { %v2476_v31 = vsel %vm531_vm3, %v2472_v30, 0.0  ;;  %v2471_v32 = vmul.f32 %v2469_v29, %v2469_v29 }
 0x8cc   : > { %2477 = vadd.xlane.f32.xlu0 %v2476_v31 }
 0x8cd   : > { %v2473_v33 = vsel %vm531_vm3, %v2471_v32, 0.0 }
 0x8ce   : > { %2474 = vadd.xlane.f32.xlu1 %v2473_v33 }
 0x955   : > { %v2478_v34 = vpop.xlane.xlu0 %2477 }
 0x956   : > { %v2480_v35 = vmul.f32 0.03125, %v2478_v34 }
 0x957   : > { %v2475_v36 = vpop.xlane.xlu1 %2474 }
 0x958   : > { %v2482_v12 = vadd.f32 1e-05, %v2480_v35  ;;  %v2479_v37 = vmul.f32 0.03125, %v2475_v36 }
 0x95a   : > { %3023 = vrsqrt.f32 %v2482_v12  ;;  %v2481_v9 = vadd.f32 1e-05, %v2479_v37 }
 0x95c   : > { %3025 = vrsqrt.f32 %v2481_v9 }
 0x967   : > { %v3024_v41 = vpop.eup %3023 }
 0x968   : > { %v2486_v43 = vmul.f32 %v3024_v41, %v2470_v28 }
 0x969   : > { %v3026_v44 = vpop.eup %3025 }
 0x96a   : > { %v2492_v45 = vmul.f32 %v2490_v40, %v2486_v43  ;;  %v2485_v46 = vmul.f32 %v3026_v44, %v2469_v29 }
 0x96c   : > { %v2498_v47 = vadd.f32 %v2496_v42, %v2492_v45  ;;  %v2491_v48 = vmul.f32 %v2490_v40, %v2485_v46 }
 0x96e   : > { %2500 = vst.msk [vmem:[%s3429_s9 + $0x8] sm:$0xff] %vm531_vm3, %v2498_v47  ;;  %v2497_v49 = vadd.f32 %v2496_v42, %v2491_v48 }
 0x970   : > { %2499 = vst.msk [vmem:[%s3429_s9] sm:$0xff] %vm531_vm3, %v2497_v49 }
 0x971 PF: > { %s19_s11 = sadd.s32 1, %s3049_s11   ;;  %s3437_s1 = sld [smem:[#allocation3_spill]] }
 0x972   : > { %p16_p6 = scmp.ge.s32.totalorder %s19_s11, 4   ;;  %s3438_s30 = smov %s3045_s10 }
 0x974   :  { %18 = sbr.rel (!%p16_p6) target bundleno = 4 (0x4), region = 114 }
 0x977   : > { %s3439_s10 = smov %s3437_s1 }

</bundles_post_ra>
